<compile_context>
chip_gen: v6e
topology: v6e:2x2x1
jax: 0.10.0
libtpu: 0.0.40
codegen_flags: <defaults>
</compile_context>

<pallas_src>
import math

import jax
import jax.numpy as jnp
import numpy as np
from jax import lax
from jax.experimental import pallas as pl
from jax.experimental.pallas import tpu as pltpu

B, L, D_MODEL, N_HEADS = 2, 16, 32, 4
E = D_MODEL // N_HEADS          # per-head dim
D_FF = 4 * D_MODEL
BL = B * L                      # 32 rows after batch folding
NG = B * N_HEADS                # 8 (batch, head) groups
LANES = NG * L                  # 128 == exactly one vreg lane width
SHIFT = int(math.log2(L))       # lane -> group index shift (L = 16)
EPS = 1e-5                      # nn.LayerNorm default eps
LOG3 = math.log(3.0)
INV_SQRT_2PI = 1.0 / math.sqrt(2.0 * math.pi)
SCALE = 1.0 / math.sqrt(E)


def _dot(a, b):
    return jnp.dot(a, b, preferred_element_type=jnp.float32)


def _layernorm(x, g, b):
    mu = jnp.mean(x, axis=-1, keepdims=True)
    var = jnp.mean((x - mu) ** 2, axis=-1, keepdims=True)
    return (x - mu) * lax.rsqrt(var + EPS) * g + b


def encoder_layer_kernel(x_ref, wcat_ref, vec_ref, wo_ref, w1_ref, w2_ref,
                         out_ref, series_ref, prior_ref, sigma_ref,
                         scores_scr, invsig_scr, ctx_scr):
    # Whole problem in one invocation: rows are (b, l) pairs.
    x = x_ref[...]                                         # (32, 32)

    # --- fused QKV + sigma projection: one MXU push -> (32, 128) dense ---
    proj = _dot(x, wcat_ref[...]) + vec_ref[0:1, :]
    q = proj[:, 0:D_MODEL]
    k = proj[:, D_MODEL:2 * D_MODEL]
    v = proj[:, 2 * D_MODEL:3 * D_MODEL]
    sig = proj[:, 3 * D_MODEL:3 * D_MODEL + N_HEADS]       # (32, 4)

    # --- sigma activation + EXACT reciprocal on the tiny (32,4) tile ---
    s_act = jax.nn.sigmoid(sig * 5.0) + 1e-5
    s_act = jnp.exp(s_act * LOG3) - 1.0                    # 3**s - 1
    inv_s = 1.0 / s_act                                    # exact; feeds prior
    sigma_ref[...] = s_act                                 # broadcast outside

    # --- per-(b,h) scores + 1/sigma, lane-packed into (16, 128) scratch ---
    # lane index = (b*N_HEADS + h)*L + key_pos
    for b in range(B):
        for h in range(N_HEADS):
            g = b * N_HEADS + h
            qbh = q[b * L:(b + 1) * L, h * E:(h + 1) * E]  # (16, 8)
            kbh = k[b * L:(b + 1) * L, h * E:(h + 1) * E]  # (16, 8)
            s_bh = lax.dot_general(qbh, kbh, (((1,), (1,)), ((), ())),
                                   preferred_element_type=jnp.float32)
            scores_scr[:, g * L:(g + 1) * L] = s_bh
            invsig_scr[:, g * L:(g + 1) * L] = jnp.broadcast_to(
                inv_s[b * L:(b + 1) * L, h:h + 1], (L, L))

    scores = scores_scr[...] * SCALE                       # (16, 128) dense

    # --- per-group softmax on full 128-lane vregs ---
    # Subtracting the row-global max is a constant shift within every
    # 16-lane group, so each group's softmax is unchanged.
    m_row = jnp.max(scores, axis=-1, keepdims=True)        # (16, 1)
    ex = jnp.exp(scores - m_row)
    # segmented sum + broadcast in one MXU push against a constant
    # block-diagonal ones matrix built from iota.
    r_idx = lax.broadcasted_iota(jnp.int32, (LANES, LANES), 0)
    c_idx = lax.broadcasted_iota(jnp.int32, (LANES, LANES), 1)
    ones_bd = jnp.where((r_idx >> SHIFT) == (c_idx >> SHIFT), 1.0, 0.0)
    denom = _dot(ex, ones_bd)                              # (16, 128) group sums
    series = ex * pl.reciprocal(denom, approx=True)
    series_ref[...] = series                               # dense 128-lane store

    # --- prior, lane-packed; |i - j| built in-kernel from iota ---
    ri = lax.broadcasted_iota(jnp.int32, (L, LANES), 0).astype(jnp.float32)
    ci = (lax.broadcasted_iota(jnp.int32, (L, LANES), 1) & (L - 1)
          ).astype(jnp.float32)                            # key pos within group
    dist = jnp.abs(ri - ci)
    inv_sig = invsig_scr[...]                              # (16, 128), exact
    prior_ref[...] = (INV_SQRT_2PI * inv_sig) * jnp.exp(
        (-0.5 * dist * dist) * inv_sig * inv_sig)

    # --- attention values: per-group ctx tiles -> (32,32) -> one out-proj ---
    for b in range(B):
        for h in range(N_HEADS):
            g = b * N_HEADS + h
            ser_g = series[:, g * L:(g + 1) * L]           # (16, 16)
            v_g = v[b * L:(b + 1) * L, h * E:(h + 1) * E]  # (16, 8)
            ctx_scr[b * L:(b + 1) * L, h * E:(h + 1) * E] = _dot(ser_g, v_g)
    new_x = _dot(ctx_scr[...], wo_ref[...]) + vec_ref[1:2, 0:D_MODEL]

    # --- residual + LayerNorm1 (dropout == identity in eval mode) ---
    xn = _layernorm(x + new_x,
                    vec_ref[1:2, D_MODEL:2 * D_MODEL],
                    vec_ref[1:2, 2 * D_MODEL:3 * D_MODEL])

    # --- FFN: conv1d(k=1) -> relu -> conv1d(k=1), residual + LayerNorm2 ---
    y = jnp.maximum(_dot(xn, w1_ref[...]) + vec_ref[2:3, :], 0.0)  # (32,128)
    y = _dot(y, w2_ref[...]) + vec_ref[1:2, 3 * D_MODEL:4 * D_MODEL]
    out_ref[...] = _layernorm(xn + y,
                              vec_ref[3:4, 0:D_MODEL],
                              vec_ref[3:4, D_MODEL:2 * D_MODEL])


def pack_params(p):
    """Pack the 18 parameters into 5 slabs (done once, outside the kernel)."""
    pad_w = 128 - (3 * D_MODEL + N_HEADS)                  # 28
    wcat = jnp.concatenate(
        [p["wq"], p["wk"], p["wv"], p["wsig"],
         jnp.zeros((D_MODEL, pad_w), jnp.float32)], axis=1)        # (32, 128)
    row0 = jnp.concatenate([p["bq"], p["bk"], p["bv"], p["bsig"],
                            jnp.zeros((1, pad_w), jnp.float32)], axis=1)
    row1 = jnp.concatenate([p["bo"], p["g1"], p["be1"], p["b2"]], axis=1)
    row2 = p["b1"]
    row3 = jnp.concatenate([p["g2"], p["be2"],
                            jnp.zeros((1, 128 - 2 * D_MODEL), jnp.float32)],
                           axis=1)
    vec = jnp.concatenate([row0, row1, row2, row3], axis=0)        # (4, 128)
    return wcat, vec, p["wo"], p["w1"], p["w2"]


@jax.jit
def encoder_layer(x, packed):
    wcat, vec, wo, w1, w2 = packed
    x2d = x.reshape(BL, D_MODEL)

    out_shape = (jax.ShapeDtypeStruct((BL, D_MODEL), jnp.float32),
                 jax.ShapeDtypeStruct((L, LANES), jnp.float32),
                 jax.ShapeDtypeStruct((L, LANES), jnp.float32),
                 jax.ShapeDtypeStruct((BL, N_HEADS), jnp.float32))

    out2d, series_p, prior_p, sigma_small = pl.pallas_call(
        encoder_layer_kernel,
        out_shape=out_shape,
        scratch_shapes=[pltpu.VMEM((L, LANES), jnp.float32),   # packed scores
                        pltpu.VMEM((L, LANES), jnp.float32),   # packed 1/sigma
                        pltpu.VMEM((BL, D_MODEL), jnp.float32)],  # ctx tiles
    )(x2d, wcat, vec, wo, w1, w2)

    out = out2d.reshape(B, L, D_MODEL)
    # packed lane = (b*N_HEADS + h)*L + s  ->  (B, H, Lq, Ls), plain XLA
    series = series_p.reshape(L, B, N_HEADS, L).transpose(1, 2, 0, 3)
    prior = prior_p.reshape(L, B, N_HEADS, L).transpose(1, 2, 0, 3)
    sigma = jnp.broadcast_to(
        sigma_small.reshape(B, L, N_HEADS).transpose(0, 2, 1)[..., None],
        (B, N_HEADS, L, L))
    return out, series, prior, sigma


# ---------------- parameter init (deterministic, PyTorch-like uniform) -------
def _linear(key, fan_in, fan_out):
    bound = 1.0 / math.sqrt(fan_in)
    kw, kb = jax.random.split(key)
    w = jax.random.uniform(kw, (fan_in, fan_out), jnp.float32, -bound, bound)
    b = jax.random.uniform(kb, (1, fan_out), jnp.float32, -bound, bound)
    return w, b


def init_params(key):
    ks = jax.random.split(key, 7)
    p = {}
    p["wq"], p["bq"] = _linear(ks[0], D_MODEL, D_MODEL)
    p["wk"], p["bk"] = _linear(ks[1], D_MODEL, D_MODEL)
    p["wv"], p["bv"] = _linear(ks[2], D_MODEL, D_MODEL)
    p["wsig"], p["bsig"] = _linear(ks[3], D_MODEL, N_HEADS)
    p["wo"], p["bo"] = _linear(ks[4], D_MODEL, D_MODEL)
    p["w1"], p["b1"] = _linear(ks[5], D_MODEL, D_FF)   # conv1 (kernel_size=1)
    p["w2"], p["b2"] = _linear(ks[6], D_FF, D_MODEL)   # conv2 (kernel_size=1)
    p["g1"] = jnp.ones((1, D_MODEL), jnp.float32)
    p["be1"] = jnp.zeros((1, D_MODEL), jnp.float32)
    p["g2"] = jnp.ones((1, D_MODEL), jnp.float32)
    p["be2"] = jnp.zeros((1, D_MODEL), jnp.float32)
    return p


# ---------------- pure-JAX reference (mirrors the PyTorch math) --------------
def _ref_layernorm(x, g, b):
    mu = jnp.mean(x, axis=-1, keepdims=True)
    var = jnp.mean((x - mu) ** 2, axis=-1, keepdims=True)
    return (x - mu) / jnp.sqrt(var + EPS) * g + b


def reference(x, p, dist):
    with jax.default_matmul_precision("highest"):
        q = (x @ p["wq"] + p["bq"]).reshape(B, L, N_HEADS, E)
        k = (x @ p["wk"] + p["bk"]).reshape(B, L, N_HEADS, E)
        v = (x @ p["wv"] + p["bv"]).reshape(B, L, N_HEADS, E)
        sig = (x @ p["wsig"] + p["bsig"]).transpose(0, 2, 1)            # (B,H,L)
        scores = jnp.einsum("blhe,bshe->bhls", q, k) / math.sqrt(E)
        series = jax.nn.softmax(scores, axis=-1)
        sig = jax.nn.sigmoid(sig * 5.0) + 1e-5
        sig = jnp.power(3.0, sig) - 1.0
        sig = jnp.broadcast_to(sig[..., None], (B, N_HEADS, L, L))
        prior = (1.0 / (math.sqrt(2.0 * math.pi) * sig)) * \
            jnp.exp(-(dist * dist) / (2.0 * sig * sig))
        V = jnp.einsum("bhls,bshd->blhd", series, v).reshape(B, L, D_MODEL)
        new_x = V @ p["wo"] + p["bo"]
        xn = _ref_layernorm(x + new_x, p["g1"], p["be1"])
        y = jnp.maximum(xn @ p["w1"] + p["b1"], 0.0) @ p["w2"] + p["b2"]
        out = _ref_layernorm(xn + y, p["g2"], p["be2"])
    return out, series, prior, sig


if __name__ == "__main__":
    key = jax.random.PRNGKey(0)
    kx, kp = jax.random.split(key)
    x = jax.random.normal(kx, (B, L, D_MODEL), jnp.float32)
    params = init_params(kp)
    packed = pack_params(params)      # one-time parameter packing

    # attn_mask is None and mask_flag=False in the AnomalyTransformer encoder.
    out, series, prior, sigma = jax.block_until_ready(encoder_layer(x, packed))

    idx = jnp.arange(L, dtype=jnp.float32)
    dist = jnp.abs(idx[:, None] - idx[None, :])            # AnomalyAttention.distances
    ref_out, ref_series, ref_prior, ref_sigma = reference(x, params, dist)
    np.testing.assert_allclose(np.asarray(out), np.asarray(ref_out), rtol=2e-2, atol=2e-2)
    np.testing.assert_allclose(np.asarray(series), np.asarray(ref_series), rtol=2e-2, atol=2e-2)
    np.testing.assert_allclose(np.asarray(prior), np.asarray(ref_prior), rtol=2e-2, atol=2e-2)
    np.testing.assert_allclose(np.asarray(sigma), np.asarray(ref_sigma), rtol=2e-2, atol=2e-2)
    print("KERNEL_OK")
</pallas_src>

<mosaic_0001>
module attributes {stable_mosaic.version = 11 : i64} {
  func.func @encoder_layer_kernel(%arg0: memref<32x32xf32, #tpu.memory_space<vmem>>, %arg1: memref<32x128xf32, #tpu.memory_space<vmem>>, %arg2: memref<4x128xf32, #tpu.memory_space<vmem>>, %arg3: memref<32x32xf32, #tpu.memory_space<vmem>>, %arg4: memref<32x128xf32, #tpu.memory_space<vmem>>, %arg5: memref<128x32xf32, #tpu.memory_space<vmem>>, %arg6: memref<32x32xf32, #tpu.memory_space<vmem>>, %arg7: memref<16x128xf32, #tpu.memory_space<vmem>>, %arg8: memref<16x128xf32, #tpu.memory_space<vmem>>, %arg9: memref<32x4xf32, #tpu.memory_space<vmem>>, %arg10: memref<16x128xf32, #tpu.memory_space<vmem>>, %arg11: memref<16x128xf32, #tpu.memory_space<vmem>>, %arg12: memref<32x32xf32, #tpu.memory_space<vmem>>) attributes {dimension_semantics = [], scalar_prefetch = 0 : i64, scratch_operands = 3 : i64, tpu.core_type = #tpu.core_type<tc>} {
    %c0 = arith.constant 0 : index
    %c0_0 = arith.constant 0 : index
    %0 = vector.load %arg0[%c0, %c0_0] : memref<32x32xf32, #tpu.memory_space<vmem>>, vector<32x32xf32>
    %c0_1 = arith.constant 0 : index
    %c0_2 = arith.constant 0 : index
    %1 = vector.load %arg1[%c0_1, %c0_2] : memref<32x128xf32, #tpu.memory_space<vmem>>, vector<32x128xf32>
    %cst = arith.constant dense<0.000000e+00> : vector<32x128xf32>
    %2 = tpu.matmul %0, %1, %cst {dimension_numbers = #tpu.dot_dimension_numbers<[1], [0], [0], [1], [0, 0, 1, 1], [], []>} : vector<32x32xf32>, vector<32x128xf32>, vector<32x128xf32> -> vector<32x128xf32>
    %c0_3 = arith.constant 0 : index
    %c0_4 = arith.constant 0 : index
    %3 = vector.load %arg2[%c0_3, %c0_4] : memref<4x128xf32, #tpu.memory_space<vmem>>, vector<1x128xf32>
    %4 = vector.broadcast %3 : vector<1x128xf32> to vector<32x128xf32>
    %5 = arith.addf %2, %4 : vector<32x128xf32>
    %6 = vector.extract_strided_slice %5 {offsets = [0, 0], sizes = [32, 32], strides = [1, 1]} : vector<32x128xf32> to vector<32x32xf32>
    %7 = vector.extract_strided_slice %5 {offsets = [0, 32], sizes = [32, 32], strides = [1, 1]} : vector<32x128xf32> to vector<32x32xf32>
    %8 = vector.extract_strided_slice %5 {offsets = [0, 64], sizes = [32, 32], strides = [1, 1]} : vector<32x128xf32> to vector<32x32xf32>
    %9 = vector.extract_strided_slice %5 {offsets = [0, 96], sizes = [32, 4], strides = [1, 1]} : vector<32x128xf32> to vector<32x4xf32>
    %cst_5 = arith.constant 5.000000e+00 : f32
    %10 = vector.broadcast %cst_5 : f32 to vector<32x4xf32>
    %11 = arith.mulf %9, %10 : vector<32x4xf32>
    %12 = arith.negf %11 : vector<32x4xf32>
    %13 = math.exp %12 : vector<32x4xf32>
    %cst_6 = arith.constant 1.000000e+00 : f32
    %14 = vector.broadcast %cst_6 : f32 to vector<32x4xf32>
    %15 = arith.addf %14, %13 : vector<32x4xf32>
    %16 = arith.divf %14, %15 : vector<32x4xf32>
    %cst_7 = arith.constant 9.99999974E-6 : f32
    %17 = vector.broadcast %cst_7 : f32 to vector<32x4xf32>
    %18 = arith.addf %16, %17 : vector<32x4xf32>
    %cst_8 = arith.constant 1.09861231 : f32
    %19 = vector.broadcast %cst_8 : f32 to vector<32x4xf32>
    %20 = arith.mulf %18, %19 : vector<32x4xf32>
    %21 = math.exp %20 : vector<32x4xf32>
    %cst_9 = arith.constant 1.000000e+00 : f32
    %22 = vector.broadcast %cst_9 : f32 to vector<32x4xf32>
    %23 = arith.subf %21, %22 : vector<32x4xf32>
    %cst_10 = arith.constant 1.000000e+00 : f32
    %24 = vector.broadcast %cst_10 : f32 to vector<32x4xf32>
    %25 = arith.divf %24, %23 : vector<32x4xf32>
    %c0_11 = arith.constant 0 : index
    %c0_12 = arith.constant 0 : index
    %26 = vector.load %arg9[%c0_11, %c0_12] : memref<32x4xf32, #tpu.memory_space<vmem>>, vector<32x4xf32>
    tpu.vector_store %arg9[%c0_11, %c0_12], %23 {strides = array<i32>} : memref<32x4xf32, #tpu.memory_space<vmem>>, vector<32x4xf32>,
    %27 = vector.extract_strided_slice %6 {offsets = [0, 0], sizes = [16, 8], strides = [1, 1]} : vector<32x32xf32> to vector<16x8xf32>
    %28 = vector.extract_strided_slice %7 {offsets = [0, 0], sizes = [16, 8], strides = [1, 1]} : vector<32x32xf32> to vector<16x8xf32>
    %cst_13 = arith.constant dense<0.000000e+00> : vector<16x16xf32>
    %29 = tpu.matmul %27, %28, %cst_13 {dimension_numbers = #tpu.dot_dimension_numbers<[1], [1], [0], [0], [0, 0, 1, 0], [], []>} : vector<16x8xf32>, vector<16x8xf32>, vector<16x16xf32> -> vector<16x16xf32>
    %c0_14 = arith.constant 0 : index
    %c0_15 = arith.constant 0 : index
    %30 = vector.load %arg10[%c0_14, %c0_15] : memref<16x128xf32, #tpu.memory_space<vmem>>, vector<16x16xf32>
    tpu.vector_store %arg10[%c0_14, %c0_15], %29 {strides = array<i32>} : memref<16x128xf32, #tpu.memory_space<vmem>>, vector<16x16xf32>,
    %31 = vector.extract_strided_slice %25 {offsets = [0, 0], sizes = [16, 1], strides = [1, 1]} : vector<32x4xf32> to vector<16x1xf32>
    %32 = vector.shape_cast %31 : vector<16x1xf32> to vector<16x1xf32>
    %33 = vector.broadcast %32 : vector<16x1xf32> to vector<16x16xf32>
    %c0_16 = arith.constant 0 : index
    %c0_17 = arith.constant 0 : index
    %34 = vector.load %arg11[%c0_16, %c0_17] : memref<16x128xf32, #tpu.memory_space<vmem>>, vector<16x16xf32>
    tpu.vector_store %arg11[%c0_16, %c0_17], %33 {strides = array<i32>} : memref<16x128xf32, #tpu.memory_space<vmem>>, vector<16x16xf32>,
    %35 = vector.extract_strided_slice %6 {offsets = [0, 8], sizes = [16, 8], strides = [1, 1]} : vector<32x32xf32> to vector<16x8xf32>
    %36 = vector.extract_strided_slice %7 {offsets = [0, 8], sizes = [16, 8], strides = [1, 1]} : vector<32x32xf32> to vector<16x8xf32>
    %cst_18 = arith.constant dense<0.000000e+00> : vector<16x16xf32>
    %37 = tpu.matmul %35, %36, %cst_18 {dimension_numbers = #tpu.dot_dimension_numbers<[1], [1], [0], [0], [0, 0, 1, 0], [], []>} : vector<16x8xf32>, vector<16x8xf32>, vector<16x16xf32> -> vector<16x16xf32>
    %c0_19 = arith.constant 0 : index
    %c16 = arith.constant 16 : index
    %38 = vector.load %arg10[%c0_19, %c16] : memref<16x128xf32, #tpu.memory_space<vmem>>, vector<16x16xf32>
    tpu.vector_store %arg10[%c0_19, %c16], %37 {strides = array<i32>} : memref<16x128xf32, #tpu.memory_space<vmem>>, vector<16x16xf32>,
    %39 = vector.extract_strided_slice %25 {offsets = [0, 1], sizes = [16, 1], strides = [1, 1]} : vector<32x4xf32> to vector<16x1xf32>
    %40 = vector.shape_cast %39 : vector<16x1xf32> to vector<16x1xf32>
    %41 = vector.broadcast %40 : vector<16x1xf32> to vector<16x16xf32>
    %c0_20 = arith.constant 0 : index
    %c16_21 = arith.constant 16 : index
    %42 = vector.load %arg11[%c0_20, %c16_21] : memref<16x128xf32, #tpu.memory_space<vmem>>, vector<16x16xf32>
    tpu.vector_store %arg11[%c0_20, %c16_21], %41 {strides = array<i32>} : memref<16x128xf32, #tpu.memory_space<vmem>>, vector<16x16xf32>,
    %43 = vector.extract_strided_slice %6 {offsets = [0, 16], sizes = [16, 8], strides = [1, 1]} : vector<32x32xf32> to vector<16x8xf32>
    %44 = vector.extract_strided_slice %7 {offsets = [0, 16], sizes = [16, 8], strides = [1, 1]} : vector<32x32xf32> to vector<16x8xf32>
    %cst_22 = arith.constant dense<0.000000e+00> : vector<16x16xf32>
    %45 = tpu.matmul %43, %44, %cst_22 {dimension_numbers = #tpu.dot_dimension_numbers<[1], [1], [0], [0], [0, 0, 1, 0], [], []>} : vector<16x8xf32>, vector<16x8xf32>, vector<16x16xf32> -> vector<16x16xf32>
    %c0_23 = arith.constant 0 : index
    %c32 = arith.constant 32 : index
    %46 = vector.load %arg10[%c0_23, %c32] : memref<16x128xf32, #tpu.memory_space<vmem>>, vector<16x16xf32>
    tpu.vector_store %arg10[%c0_23, %c32], %45 {strides = array<i32>} : memref<16x128xf32, #tpu.memory_space<vmem>>, vector<16x16xf32>,
    %47 = vector.extract_strided_slice %25 {offsets = [0, 2], sizes = [16, 1], strides = [1, 1]} : vector<32x4xf32> to vector<16x1xf32>
    %48 = vector.shape_cast %47 : vector<16x1xf32> to vector<16x1xf32>
    %49 = vector.broadcast %48 : vector<16x1xf32> to vector<16x16xf32>
    %c0_24 = arith.constant 0 : index
    %c32_25 = arith.constant 32 : index
    %50 = vector.load %arg11[%c0_24, %c32_25] : memref<16x128xf32, #tpu.memory_space<vmem>>, vector<16x16xf32>
    tpu.vector_store %arg11[%c0_24, %c32_25], %49 {strides = array<i32>} : memref<16x128xf32, #tpu.memory_space<vmem>>, vector<16x16xf32>,
    %51 = vector.extract_strided_slice %6 {offsets = [0, 24], sizes = [16, 8], strides = [1, 1]} : vector<32x32xf32> to vector<16x8xf32>
    %52 = vector.extract_strided_slice %7 {offsets = [0, 24], sizes = [16, 8], strides = [1, 1]} : vector<32x32xf32> to vector<16x8xf32>
    %cst_26 = arith.constant dense<0.000000e+00> : vector<16x16xf32>
    %53 = tpu.matmul %51, %52, %cst_26 {dimension_numbers = #tpu.dot_dimension_numbers<[1], [1], [0], [0], [0, 0, 1, 0], [], []>} : vector<16x8xf32>, vector<16x8xf32>, vector<16x16xf32> -> vector<16x16xf32>
    %c0_27 = arith.constant 0 : index
    %c48 = arith.constant 48 : index
    %54 = vector.load %arg10[%c0_27, %c48] : memref<16x128xf32, #tpu.memory_space<vmem>>, vector<16x16xf32>
    tpu.vector_store %arg10[%c0_27, %c48], %53 {strides = array<i32>} : memref<16x128xf32, #tpu.memory_space<vmem>>, vector<16x16xf32>,
    %55 = vector.extract_strided_slice %25 {offsets = [0, 3], sizes = [16, 1], strides = [1, 1]} : vector<32x4xf32> to vector<16x1xf32>
    %56 = vector.shape_cast %55 : vector<16x1xf32> to vector<16x1xf32>
    %57 = vector.broadcast %56 : vector<16x1xf32> to vector<16x16xf32>
    %c0_28 = arith.constant 0 : index
    %c48_29 = arith.constant 48 : index
    %58 = vector.load %arg11[%c0_28, %c48_29] : memref<16x128xf32, #tpu.memory_space<vmem>>, vector<16x16xf32>
    tpu.vector_store %arg11[%c0_28, %c48_29], %57 {strides = array<i32>} : memref<16x128xf32, #tpu.memory_space<vmem>>, vector<16x16xf32>,
    %59 = vector.extract_strided_slice %6 {offsets = [16, 0], sizes = [16, 8], strides = [1, 1]} : vector<32x32xf32> to vector<16x8xf32>
    %60 = vector.extract_strided_slice %7 {offsets = [16, 0], sizes = [16, 8], strides = [1, 1]} : vector<32x32xf32> to vector<16x8xf32>
    %cst_30 = arith.constant dense<0.000000e+00> : vector<16x16xf32>
    %61 = tpu.matmul %59, %60, %cst_30 {dimension_numbers = #tpu.dot_dimension_numbers<[1], [1], [0], [0], [0, 0, 1, 0], [], []>} : vector<16x8xf32>, vector<16x8xf32>, vector<16x16xf32> -> vector<16x16xf32>
    %c0_31 = arith.constant 0 : index
    %c64 = arith.constant 64 : index
    %62 = vector.load %arg10[%c0_31, %c64] : memref<16x128xf32, #tpu.memory_space<vmem>>, vector<16x16xf32>
    tpu.vector_store %arg10[%c0_31, %c64], %61 {strides = array<i32>} : memref<16x128xf32, #tpu.memory_space<vmem>>, vector<16x16xf32>,
    %63 = vector.extract_strided_slice %25 {offsets = [16, 0], sizes = [16, 1], strides = [1, 1]} : vector<32x4xf32> to vector<16x1xf32>
    %64 = vector.shape_cast %63 : vector<16x1xf32> to vector<16x1xf32>
    %65 = vector.broadcast %64 : vector<16x1xf32> to vector<16x16xf32>
    %c0_32 = arith.constant 0 : index
    %c64_33 = arith.constant 64 : index
    %66 = vector.load %arg11[%c0_32, %c64_33] : memref<16x128xf32, #tpu.memory_space<vmem>>, vector<16x16xf32>
    tpu.vector_store %arg11[%c0_32, %c64_33], %65 {strides = array<i32>} : memref<16x128xf32, #tpu.memory_space<vmem>>, vector<16x16xf32>,
    %67 = vector.extract_strided_slice %6 {offsets = [16, 8], sizes = [16, 8], strides = [1, 1]} : vector<32x32xf32> to vector<16x8xf32>
    %68 = vector.extract_strided_slice %7 {offsets = [16, 8], sizes = [16, 8], strides = [1, 1]} : vector<32x32xf32> to vector<16x8xf32>
    %cst_34 = arith.constant dense<0.000000e+00> : vector<16x16xf32>
    %69 = tpu.matmul %67, %68, %cst_34 {dimension_numbers = #tpu.dot_dimension_numbers<[1], [1], [0], [0], [0, 0, 1, 0], [], []>} : vector<16x8xf32>, vector<16x8xf32>, vector<16x16xf32> -> vector<16x16xf32>
    %c0_35 = arith.constant 0 : index
    %c80 = arith.constant 80 : index
    %70 = vector.load %arg10[%c0_35, %c80] : memref<16x128xf32, #tpu.memory_space<vmem>>, vector<16x16xf32>
    tpu.vector_store %arg10[%c0_35, %c80], %69 {strides = array<i32>} : memref<16x128xf32, #tpu.memory_space<vmem>>, vector<16x16xf32>,
    %71 = vector.extract_strided_slice %25 {offsets = [16, 1], sizes = [16, 1], strides = [1, 1]} : vector<32x4xf32> to vector<16x1xf32>
    %72 = vector.shape_cast %71 : vector<16x1xf32> to vector<16x1xf32>
    %73 = vector.broadcast %72 : vector<16x1xf32> to vector<16x16xf32>
    %c0_36 = arith.constant 0 : index
    %c80_37 = arith.constant 80 : index
    %74 = vector.load %arg11[%c0_36, %c80_37] : memref<16x128xf32, #tpu.memory_space<vmem>>, vector<16x16xf32>
    tpu.vector_store %arg11[%c0_36, %c80_37], %73 {strides = array<i32>} : memref<16x128xf32, #tpu.memory_space<vmem>>, vector<16x16xf32>,
    %75 = vector.extract_strided_slice %6 {offsets = [16, 16], sizes = [16, 8], strides = [1, 1]} : vector<32x32xf32> to vector<16x8xf32>
    %76 = vector.extract_strided_slice %7 {offsets = [16, 16], sizes = [16, 8], strides = [1, 1]} : vector<32x32xf32> to vector<16x8xf32>
    %cst_38 = arith.constant dense<0.000000e+00> : vector<16x16xf32>
    %77 = tpu.matmul %75, %76, %cst_38 {dimension_numbers = #tpu.dot_dimension_numbers<[1], [1], [0], [0], [0, 0, 1, 0], [], []>} : vector<16x8xf32>, vector<16x8xf32>, vector<16x16xf32> -> vector<16x16xf32>
    %c0_39 = arith.constant 0 : index
    %c96 = arith.constant 96 : index
    %78 = vector.load %arg10[%c0_39, %c96] : memref<16x128xf32, #tpu.memory_space<vmem>>, vector<16x16xf32>
    tpu.vector_store %arg10[%c0_39, %c96], %77 {strides = array<i32>} : memref<16x128xf32, #tpu.memory_space<vmem>>, vector<16x16xf32>,
    %79 = vector.extract_strided_slice %25 {offsets = [16, 2], sizes = [16, 1], strides = [1, 1]} : vector<32x4xf32> to vector<16x1xf32>
    %80 = vector.shape_cast %79 : vector<16x1xf32> to vector<16x1xf32>
    %81 = vector.broadcast %80 : vector<16x1xf32> to vector<16x16xf32>
    %c0_40 = arith.constant 0 : index
    %c96_41 = arith.constant 96 : index
    %82 = vector.load %arg11[%c0_40, %c96_41] : memref<16x128xf32, #tpu.memory_space<vmem>>, vector<16x16xf32>
    tpu.vector_store %arg11[%c0_40, %c96_41], %81 {strides = array<i32>} : memref<16x128xf32, #tpu.memory_space<vmem>>, vector<16x16xf32>,
    %83 = vector.extract_strided_slice %6 {offsets = [16, 24], sizes = [16, 8], strides = [1, 1]} : vector<32x32xf32> to vector<16x8xf32>
    %84 = vector.extract_strided_slice %7 {offsets = [16, 24], sizes = [16, 8], strides = [1, 1]} : vector<32x32xf32> to vector<16x8xf32>
    %cst_42 = arith.constant dense<0.000000e+00> : vector<16x16xf32>
    %85 = tpu.matmul %83, %84, %cst_42 {dimension_numbers = #tpu.dot_dimension_numbers<[1], [1], [0], [0], [0, 0, 1, 0], [], []>} : vector<16x8xf32>, vector<16x8xf32>, vector<16x16xf32> -> vector<16x16xf32>
    %c0_43 = arith.constant 0 : index
    %c112 = arith.constant 112 : index
    %86 = vector.load %arg10[%c0_43, %c112] : memref<16x128xf32, #tpu.memory_space<vmem>>, vector<16x16xf32>
    tpu.vector_store %arg10[%c0_43, %c112], %85 {strides = array<i32>} : memref<16x128xf32, #tpu.memory_space<vmem>>, vector<16x16xf32>,
    %87 = vector.extract_strided_slice %25 {offsets = [16, 3], sizes = [16, 1], strides = [1, 1]} : vector<32x4xf32> to vector<16x1xf32>
    %88 = vector.shape_cast %87 : vector<16x1xf32> to vector<16x1xf32>
    %89 = vector.broadcast %88 : vector<16x1xf32> to vector<16x16xf32>
    %c0_44 = arith.constant 0 : index
    %c112_45 = arith.constant 112 : index
    %90 = vector.load %arg11[%c0_44, %c112_45] : memref<16x128xf32, #tpu.memory_space<vmem>>, vector<16x16xf32>
    tpu.vector_store %arg11[%c0_44, %c112_45], %89 {strides = array<i32>} : memref<16x128xf32, #tpu.memory_space<vmem>>, vector<16x16xf32>,
    %c0_46 = arith.constant 0 : index
    %c0_47 = arith.constant 0 : index
    %91 = vector.load %arg10[%c0_46, %c0_47] : memref<16x128xf32, #tpu.memory_space<vmem>>, vector<16x128xf32>
    %cst_48 = arith.constant 0.353553385 : f32
    %92 = vector.broadcast %cst_48 : f32 to vector<16x128xf32>
    %93 = arith.mulf %91, %92 : vector<16x128xf32>
    %cst_49 = arith.constant dense<0xFF800000> : vector<16xf32>
    %94 = vector.multi_reduction <maximumf>, %93, %cst_49 [1] : vector<16x128xf32> to vector<16xf32>
    %95 = vector.shape_cast %94 : vector<16xf32> to vector<16x1xf32>
    %96 = vector.broadcast %95 : vector<16x1xf32> to vector<16x128xf32>
    %97 = arith.subf %93, %96 : vector<16x128xf32>
    %98 = math.exp %97 : vector<16x128xf32>
    %99 = tpu.iota {dimensions = array<i32: 0>} : vector<128x128xi32>
    %100 = tpu.iota {dimensions = array<i32: 1>} : vector<128x128xi32>
    %c4_i32 = arith.constant 4 : i32
    %101 = vector.broadcast %c4_i32 : i32 to vector<128x128xi32>
    %102 = arith.shrsi %99, %101 : vector<128x128xi32>
    %c4_i32_50 = arith.constant 4 : i32
    %103 = vector.broadcast %c4_i32_50 : i32 to vector<128x128xi32>
    %104 = arith.shrsi %100, %103 : vector<128x128xi32>
    %105 = arith.cmpi eq, %102, %104 : vector<128x128xi32>
    %cst_51 = arith.constant 1.000000e+00 : f32
    %cst_52 = arith.constant 0.000000e+00 : f32
    %106 = vector.broadcast %cst_51 : f32 to vector<128x128xf32>
    %107 = vector.broadcast %cst_52 : f32 to vector<128x128xf32>
    %108 = arith.select %105, %106, %107 : vector<128x128xi1>, vector<128x128xf32>
    %cst_53 = arith.constant dense<0.000000e+00> : vector<16x128xf32>
    %109 = tpu.matmul %98, %108, %cst_53 {dimension_numbers = #tpu.dot_dimension_numbers<[1], [0], [0], [1], [0, 0, 1, 1], [], []>} : vector<16x128xf32>, vector<128x128xf32>, vector<16x128xf32> -> vector<16x128xf32>
    %110 = tpu.reciprocal %109 {approx = true} : vector<16x128xf32> -> vector<16x128xf32>
    %111 = arith.mulf %98, %110 : vector<16x128xf32>
    %c0_54 = arith.constant 0 : index
    %c0_55 = arith.constant 0 : index
    %112 = vector.load %arg7[%c0_54, %c0_55] : memref<16x128xf32, #tpu.memory_space<vmem>>, vector<16x128xf32>
    tpu.vector_store %arg7[%c0_54, %c0_55], %111 {strides = array<i32>} : memref<16x128xf32, #tpu.memory_space<vmem>>, vector<16x128xf32>,
    %113 = tpu.iota {dimensions = array<i32: 0>} : vector<16x128xi32>
    %114 = arith.sitofp %113 : vector<16x128xi32> to vector<16x128xf32>
    %115 = tpu.iota {dimensions = array<i32: 1>} : vector<16x128xi32>
    %c15_i32 = arith.constant 15 : i32
    %116 = vector.broadcast %c15_i32 : i32 to vector<16x128xi32>
    %117 = arith.andi %115, %116 : vector<16x128xi32>
    %118 = arith.sitofp %117 : vector<16x128xi32> to vector<16x128xf32>
    %119 = arith.subf %114, %118 : vector<16x128xf32>
    %120 = math.absf %119 : vector<16x128xf32>
    %c0_56 = arith.constant 0 : index
    %c0_57 = arith.constant 0 : index
    %121 = vector.load %arg11[%c0_56, %c0_57] : memref<16x128xf32, #tpu.memory_space<vmem>>, vector<16x128xf32>
    %cst_58 = arith.constant 0.398942292 : f32
    %122 = vector.broadcast %cst_58 : f32 to vector<16x128xf32>
    %123 = arith.mulf %122, %121 : vector<16x128xf32>
    %cst_59 = arith.constant -5.000000e-01 : f32
    %124 = vector.broadcast %cst_59 : f32 to vector<16x128xf32>
    %125 = arith.mulf %124, %120 : vector<16x128xf32>
    %126 = arith.mulf %125, %120 : vector<16x128xf32>
    %127 = arith.mulf %126, %121 : vector<16x128xf32>
    %128 = arith.mulf %127, %121 : vector<16x128xf32>
    %129 = math.exp %128 : vector<16x128xf32>
    %130 = arith.mulf %123, %129 : vector<16x128xf32>
    %c0_60 = arith.constant 0 : index
    %c0_61 = arith.constant 0 : index
    %131 = vector.load %arg8[%c0_60, %c0_61] : memref<16x128xf32, #tpu.memory_space<vmem>>, vector<16x128xf32>
    tpu.vector_store %arg8[%c0_60, %c0_61], %130 {strides = array<i32>} : memref<16x128xf32, #tpu.memory_space<vmem>>, vector<16x128xf32>,
    %132 = vector.extract_strided_slice %111 {offsets = [0, 0], sizes = [16, 16], strides = [1, 1]} : vector<16x128xf32> to vector<16x16xf32>
    %133 = vector.extract_strided_slice %8 {offsets = [0, 0], sizes = [16, 8], strides = [1, 1]} : vector<32x32xf32> to vector<16x8xf32>
    %cst_62 = arith.constant dense<0.000000e+00> : vector<16x8xf32>
    %134 = tpu.matmul %132, %133, %cst_62 {dimension_numbers = #tpu.dot_dimension_numbers<[1], [0], [0], [1], [0, 0, 1, 1], [], []>} : vector<16x16xf32>, vector<16x8xf32>, vector<16x8xf32> -> vector<16x8xf32>
    %c0_63 = arith.constant 0 : index
    %c0_64 = arith.constant 0 : index
    %135 = vector.load %arg12[%c0_63, %c0_64] : memref<32x32xf32, #tpu.memory_space<vmem>>, vector<16x8xf32>
    tpu.vector_store %arg12[%c0_63, %c0_64], %134 {strides = array<i32>} : memref<32x32xf32, #tpu.memory_space<vmem>>, vector<16x8xf32>,
    %136 = vector.extract_strided_slice %111 {offsets = [0, 16], sizes = [16, 16], strides = [1, 1]} : vector<16x128xf32> to vector<16x16xf32>
    %137 = vector.extract_strided_slice %8 {offsets = [0, 8], sizes = [16, 8], strides = [1, 1]} : vector<32x32xf32> to vector<16x8xf32>
    %cst_65 = arith.constant dense<0.000000e+00> : vector<16x8xf32>
    %138 = tpu.matmul %136, %137, %cst_65 {dimension_numbers = #tpu.dot_dimension_numbers<[1], [0], [0], [1], [0, 0, 1, 1], [], []>} : vector<16x16xf32>, vector<16x8xf32>, vector<16x8xf32> -> vector<16x8xf32>
    %c0_66 = arith.constant 0 : index
    %c8 = arith.constant 8 : index
    %139 = vector.load %arg12[%c0_66, %c8] : memref<32x32xf32, #tpu.memory_space<vmem>>, vector<16x8xf32>
    tpu.vector_store %arg12[%c0_66, %c8], %138 {strides = array<i32>} : memref<32x32xf32, #tpu.memory_space<vmem>>, vector<16x8xf32>,
    %140 = vector.extract_strided_slice %111 {offsets = [0, 32], sizes = [16, 16], strides = [1, 1]} : vector<16x128xf32> to vector<16x16xf32>
    %141 = vector.extract_strided_slice %8 {offsets = [0, 16], sizes = [16, 8], strides = [1, 1]} : vector<32x32xf32> to vector<16x8xf32>
    %cst_67 = arith.constant dense<0.000000e+00> : vector<16x8xf32>
    %142 = tpu.matmul %140, %141, %cst_67 {dimension_numbers = #tpu.dot_dimension_numbers<[1], [0], [0], [1], [0, 0, 1, 1], [], []>} : vector<16x16xf32>, vector<16x8xf32>, vector<16x8xf32> -> vector<16x8xf32>
    %c0_68 = arith.constant 0 : index
    %c16_69 = arith.constant 16 : index
    %143 = vector.load %arg12[%c0_68, %c16_69] : memref<32x32xf32, #tpu.memory_space<vmem>>, vector<16x8xf32>
    tpu.vector_store %arg12[%c0_68, %c16_69], %142 {strides = array<i32>} : memref<32x32xf32, #tpu.memory_space<vmem>>, vector<16x8xf32>,
    %144 = vector.extract_strided_slice %111 {offsets = [0, 48], sizes = [16, 16], strides = [1, 1]} : vector<16x128xf32> to vector<16x16xf32>
    %145 = vector.extract_strided_slice %8 {offsets = [0, 24], sizes = [16, 8], strides = [1, 1]} : vector<32x32xf32> to vector<16x8xf32>
    %cst_70 = arith.constant dense<0.000000e+00> : vector<16x8xf32>
    %146 = tpu.matmul %144, %145, %cst_70 {dimension_numbers = #tpu.dot_dimension_numbers<[1], [0], [0], [1], [0, 0, 1, 1], [], []>} : vector<16x16xf32>, vector<16x8xf32>, vector<16x8xf32> -> vector<16x8xf32>
    %c0_71 = arith.constant 0 : index
    %c24 = arith.constant 24 : index
    %147 = vector.load %arg12[%c0_71, %c24] : memref<32x32xf32, #tpu.memory_space<vmem>>, vector<16x8xf32>
    tpu.vector_store %arg12[%c0_71, %c24], %146 {strides = array<i32>} : memref<32x32xf32, #tpu.memory_space<vmem>>, vector<16x8xf32>,
    %148 = vector.extract_strided_slice %111 {offsets = [0, 64], sizes = [16, 16], strides = [1, 1]} : vector<16x128xf32> to vector<16x16xf32>
    %149 = vector.extract_strided_slice %8 {offsets = [16, 0], sizes = [16, 8], strides = [1, 1]} : vector<32x32xf32> to vector<16x8xf32>
    %cst_72 = arith.constant dense<0.000000e+00> : vector<16x8xf32>
    %150 = tpu.matmul %148, %149, %cst_72 {dimension_numbers = #tpu.dot_dimension_numbers<[1], [0], [0], [1], [0, 0, 1, 1], [], []>} : vector<16x16xf32>, vector<16x8xf32>, vector<16x8xf32> -> vector<16x8xf32>
    %c16_73 = arith.constant 16 : index
    %c0_74 = arith.constant 0 : index
    %151 = vector.load %arg12[%c16_73, %c0_74] : memref<32x32xf32, #tpu.memory_space<vmem>>, vector<16x8xf32>
    tpu.vector_store %arg12[%c16_73, %c0_74], %150 {strides = array<i32>} : memref<32x32xf32, #tpu.memory_space<vmem>>, vector<16x8xf32>,
    %152 = vector.extract_strided_slice %111 {offsets = [0, 80], sizes = [16, 16], strides = [1, 1]} : vector<16x128xf32> to vector<16x16xf32>
    %153 = vector.extract_strided_slice %8 {offsets = [16, 8], sizes = [16, 8], strides = [1, 1]} : vector<32x32xf32> to vector<16x8xf32>
    %cst_75 = arith.constant dense<0.000000e+00> : vector<16x8xf32>
    %154 = tpu.matmul %152, %153, %cst_75 {dimension_numbers = #tpu.dot_dimension_numbers<[1], [0], [0], [1], [0, 0, 1, 1], [], []>} : vector<16x16xf32>, vector<16x8xf32>, vector<16x8xf32> -> vector<16x8xf32>
    %c16_76 = arith.constant 16 : index
    %c8_77 = arith.constant 8 : index
    %155 = vector.load %arg12[%c16_76, %c8_77] : memref<32x32xf32, #tpu.memory_space<vmem>>, vector<16x8xf32>
    tpu.vector_store %arg12[%c16_76, %c8_77], %154 {strides = array<i32>} : memref<32x32xf32, #tpu.memory_space<vmem>>, vector<16x8xf32>,
    %156 = vector.extract_strided_slice %111 {offsets = [0, 96], sizes = [16, 16], strides = [1, 1]} : vector<16x128xf32> to vector<16x16xf32>
    %157 = vector.extract_strided_slice %8 {offsets = [16, 16], sizes = [16, 8], strides = [1, 1]} : vector<32x32xf32> to vector<16x8xf32>
    %cst_78 = arith.constant dense<0.000000e+00> : vector<16x8xf32>
    %158 = tpu.matmul %156, %157, %cst_78 {dimension_numbers = #tpu.dot_dimension_numbers<[1], [0], [0], [1], [0, 0, 1, 1], [], []>} : vector<16x16xf32>, vector<16x8xf32>, vector<16x8xf32> -> vector<16x8xf32>
    %c16_79 = arith.constant 16 : index
    %c16_80 = arith.constant 16 : index
    %159 = vector.load %arg12[%c16_79, %c16_80] : memref<32x32xf32, #tpu.memory_space<vmem>>, vector<16x8xf32>
    tpu.vector_store %arg12[%c16_79, %c16_80], %158 {strides = array<i32>} : memref<32x32xf32, #tpu.memory_space<vmem>>, vector<16x8xf32>,
    %160 = vector.extract_strided_slice %111 {offsets = [0, 112], sizes = [16, 16], strides = [1, 1]} : vector<16x128xf32> to vector<16x16xf32>
    %161 = vector.extract_strided_slice %8 {offsets = [16, 24], sizes = [16, 8], strides = [1, 1]} : vector<32x32xf32> to vector<16x8xf32>
    %cst_81 = arith.constant dense<0.000000e+00> : vector<16x8xf32>
    %162 = tpu.matmul %160, %161, %cst_81 {dimension_numbers = #tpu.dot_dimension_numbers<[1], [0], [0], [1], [0, 0, 1, 1], [], []>} : vector<16x16xf32>, vector<16x8xf32>, vector<16x8xf32> -> vector<16x8xf32>
    %c16_82 = arith.constant 16 : index
    %c24_83 = arith.constant 24 : index
    %163 = vector.load %arg12[%c16_82, %c24_83] : memref<32x32xf32, #tpu.memory_space<vmem>>, vector<16x8xf32>
    tpu.vector_store %arg12[%c16_82, %c24_83], %162 {strides = array<i32>} : memref<32x32xf32, #tpu.memory_space<vmem>>, vector<16x8xf32>,
    %c0_84 = arith.constant 0 : index
    %c0_85 = arith.constant 0 : index
    %164 = vector.load %arg12[%c0_84, %c0_85] : memref<32x32xf32, #tpu.memory_space<vmem>>, vector<32x32xf32>
    %c0_86 = arith.constant 0 : index
    %c0_87 = arith.constant 0 : index
    %165 = vector.load %arg3[%c0_86, %c0_87] : memref<32x32xf32, #tpu.memory_space<vmem>>, vector<32x32xf32>
    %cst_88 = arith.constant dense<0.000000e+00> : vector<32x32xf32>
    %166 = tpu.matmul %164, %165, %cst_88 {dimension_numbers = #tpu.dot_dimension_numbers<[1], [0], [0], [1], [0, 0, 1, 1], [], []>} : vector<32x32xf32>, vector<32x32xf32>, vector<32x32xf32> -> vector<32x32xf32>
    %c1 = arith.constant 1 : index
    %c0_89 = arith.constant 0 : index
    %167 = vector.load %arg2[%c1, %c0_89] : memref<4x128xf32, #tpu.memory_space<vmem>>, vector<1x32xf32>
    %168 = vector.broadcast %167 : vector<1x32xf32> to vector<32x32xf32>
    %169 = arith.addf %166, %168 : vector<32x32xf32>
    %170 = arith.addf %0, %169 : vector<32x32xf32>
    %c1_90 = arith.constant 1 : index
    %c32_91 = arith.constant 32 : index
    %171 = vector.load %arg2[%c1_90, %c32_91] : memref<4x128xf32, #tpu.memory_space<vmem>>, vector<1x32xf32>
    %c1_92 = arith.constant 1 : index
    %c64_93 = arith.constant 64 : index
    %172 = vector.load %arg2[%c1_92, %c64_93] : memref<4x128xf32, #tpu.memory_space<vmem>>, vector<1x32xf32>
    %cst_94 = arith.constant dense<0.000000e+00> : vector<32xf32>
    %173 = vector.multi_reduction <add>, %170, %cst_94 [1] : vector<32x32xf32> to vector<32xf32>
    %174 = vector.shape_cast %173 : vector<32xf32> to vector<32x1xf32>
    %cst_95 = arith.constant 3.200000e+01 : f32
    %175 = vector.broadcast %cst_95 : f32 to vector<32x1xf32>
    %176 = arith.divf %174, %175 : vector<32x1xf32>
    %177 = vector.broadcast %176 : vector<32x1xf32> to vector<32x32xf32>
    %178 = arith.subf %170, %177 : vector<32x32xf32>
    %179 = arith.mulf %178, %178 : vector<32x32xf32>
    %cst_96 = arith.constant dense<0.000000e+00> : vector<32xf32>
    %180 = vector.multi_reduction <add>, %179, %cst_96 [1] : vector<32x32xf32> to vector<32xf32>
    %181 = vector.shape_cast %180 : vector<32xf32> to vector<32x1xf32>
    %cst_97 = arith.constant 3.200000e+01 : f32
    %182 = vector.broadcast %cst_97 : f32 to vector<32x1xf32>
    %183 = arith.divf %181, %182 : vector<32x1xf32>
    %184 = vector.broadcast %176 : vector<32x1xf32> to vector<32x32xf32>
    %185 = arith.subf %170, %184 : vector<32x32xf32>
    %cst_98 = arith.constant 9.99999974E-6 : f32
    %186 = vector.broadcast %cst_98 : f32 to vector<32x1xf32>
    %187 = arith.addf %183, %186 : vector<32x1xf32>
    %188 = math.rsqrt %187 : vector<32x1xf32>
    %189 = vector.broadcast %188 : vector<32x1xf32> to vector<32x32xf32>
    %190 = arith.mulf %185, %189 : vector<32x32xf32>
    %191 = vector.broadcast %171 : vector<1x32xf32> to vector<32x32xf32>
    %192 = arith.mulf %190, %191 : vector<32x32xf32>
    %193 = vector.broadcast %172 : vector<1x32xf32> to vector<32x32xf32>
    %194 = arith.addf %192, %193 : vector<32x32xf32>
    %c0_99 = arith.constant 0 : index
    %c0_100 = arith.constant 0 : index
    %195 = vector.load %arg4[%c0_99, %c0_100] : memref<32x128xf32, #tpu.memory_space<vmem>>, vector<32x128xf32>
    %cst_101 = arith.constant dense<0.000000e+00> : vector<32x128xf32>
    %196 = tpu.matmul %194, %195, %cst_101 {dimension_numbers = #tpu.dot_dimension_numbers<[1], [0], [0], [1], [0, 0, 1, 1], [], []>} : vector<32x32xf32>, vector<32x128xf32>, vector<32x128xf32> -> vector<32x128xf32>
    %c2 = arith.constant 2 : index
    %c0_102 = arith.constant 0 : index
    %197 = vector.load %arg2[%c2, %c0_102] : memref<4x128xf32, #tpu.memory_space<vmem>>, vector<1x128xf32>
    %198 = vector.broadcast %197 : vector<1x128xf32> to vector<32x128xf32>
    %199 = arith.addf %196, %198 : vector<32x128xf32>
    %cst_103 = arith.constant 0.000000e+00 : f32
    %200 = vector.broadcast %cst_103 : f32 to vector<32x128xf32>
    %201 = arith.maximumf %199, %200 : vector<32x128xf32>
    %c0_104 = arith.constant 0 : index
    %c0_105 = arith.constant 0 : index
    %202 = vector.load %arg5[%c0_104, %c0_105] : memref<128x32xf32, #tpu.memory_space<vmem>>, vector<128x32xf32>
    %cst_106 = arith.constant dense<0.000000e+00> : vector<32x32xf32>
    %203 = tpu.matmul %201, %202, %cst_106 {dimension_numbers = #tpu.dot_dimension_numbers<[1], [0], [0], [1], [0, 0, 1, 1], [], []>} : vector<32x128xf32>, vector<128x32xf32>, vector<32x32xf32> -> vector<32x32xf32>
    %c1_107 = arith.constant 1 : index
    %c96_108 = arith.constant 96 : index
    %204 = vector.load %arg2[%c1_107, %c96_108] : memref<4x128xf32, #tpu.memory_space<vmem>>, vector<1x32xf32>
    %205 = vector.broadcast %204 : vector<1x32xf32> to vector<32x32xf32>
    %206 = arith.addf %203, %205 : vector<32x32xf32>
    %207 = arith.addf %194, %206 : vector<32x32xf32>
    %c3 = arith.constant 3 : index
    %c0_109 = arith.constant 0 : index
    %208 = vector.load %arg2[%c3, %c0_109] : memref<4x128xf32, #tpu.memory_space<vmem>>, vector<1x32xf32>
    %c3_110 = arith.constant 3 : index
    %c32_111 = arith.constant 32 : index
    %209 = vector.load %arg2[%c3_110, %c32_111] : memref<4x128xf32, #tpu.memory_space<vmem>>, vector<1x32xf32>
    %cst_112 = arith.constant dense<0.000000e+00> : vector<32xf32>
    %210 = vector.multi_reduction <add>, %207, %cst_112 [1] : vector<32x32xf32> to vector<32xf32>
    %211 = vector.shape_cast %210 : vector<32xf32> to vector<32x1xf32>
    %cst_113 = arith.constant 3.200000e+01 : f32
    %212 = vector.broadcast %cst_113 : f32 to vector<32x1xf32>
    %213 = arith.divf %211, %212 : vector<32x1xf32>
    %214 = vector.broadcast %213 : vector<32x1xf32> to vector<32x32xf32>
    %215 = arith.subf %207, %214 : vector<32x32xf32>
    %216 = arith.mulf %215, %215 : vector<32x32xf32>
    %cst_114 = arith.constant dense<0.000000e+00> : vector<32xf32>
    %217 = vector.multi_reduction <add>, %216, %cst_114 [1] : vector<32x32xf32> to vector<32xf32>
    %218 = vector.shape_cast %217 : vector<32xf32> to vector<32x1xf32>
    %cst_115 = arith.constant 3.200000e+01 : f32
    %219 = vector.broadcast %cst_115 : f32 to vector<32x1xf32>
    %220 = arith.divf %218, %219 : vector<32x1xf32>
    %221 = vector.broadcast %213 : vector<32x1xf32> to vector<32x32xf32>
    %222 = arith.subf %207, %221 : vector<32x32xf32>
    %cst_116 = arith.constant 9.99999974E-6 : f32
    %223 = vector.broadcast %cst_116 : f32 to vector<32x1xf32>
    %224 = arith.addf %220, %223 : vector<32x1xf32>
    %225 = math.rsqrt %224 : vector<32x1xf32>
    %226 = vector.broadcast %225 : vector<32x1xf32> to vector<32x32xf32>
    %227 = arith.mulf %222, %226 : vector<32x32xf32>
    %228 = vector.broadcast %208 : vector<1x32xf32> to vector<32x32xf32>
    %229 = arith.mulf %227, %228 : vector<32x32xf32>
    %230 = vector.broadcast %209 : vector<1x32xf32> to vector<32x32xf32>
    %231 = arith.addf %229, %230 : vector<32x32xf32>
    %c0_117 = arith.constant 0 : index
    %c0_118 = arith.constant 0 : index
    %232 = vector.load %arg6[%c0_117, %c0_118] : memref<32x32xf32, #tpu.memory_space<vmem>>, vector<32x32xf32>
    tpu.vector_store %arg6[%c0_117, %c0_118], %231 {strides = array<i32>} : memref<32x32xf32, #tpu.memory_space<vmem>>, vector<32x32xf32>,
    return
  }
}

</mosaic_0001>

<bundles_post_ra>
// kernel: encoder_layer.1
= control target key start
LH: loop header
LB: loop body
LE: loop exit
PB: predicated region body
PF: predicated region fallthrough
CT: control target
= control target key end

     0   :  { %vm41_vm0 = vcmask 261120   ;;  %s3853_s0 = inlined_call_operand.vmem [shape: f32[32,32], index: 0, kind: input, shape index: {}]   ;;  %s3854_s1 = inlined_call_operand.vmem [shape: f32[32,128], index: 1, kind: input, shape index: {}]   ;;  %s3855_s2 = inlined_call_operand.vmem [shape: f32[4,128], index: 2, kind: input, shape index: {}]   ;;  %s3856_s3 = inlined_call_operand.vmem [shape: f32[32,32], index: 3, kind: input, shape index: {}]   ;;  %s3857_s4 = inlined_call_operand.vmem [shape: f32[32,128], index: 4, kind: input, shape index: {}]   ;;  %s3858_s5 = inlined_call_operand.vmem [shape: f32[128,32], index: 5, kind: input, shape index: {}]   ;;  %s3859_s6 = inlined_call_operand.hbm [shape: f32[32,32], index: 6, kind: output, shape index: {0}]   ;;  %s3860_s7 = inlined_call_operand.vmem [shape: f32[16,128], index: 7, kind: output, shape index: {1}]   ;;  %s3861_s8 = inlined_call_operand.vmem [shape: f32[16,128], index: 8, kind: output, shape index: {2}]   ;;  %s3862_s9 = inlined_call_operand.vmem [shape: f32[32,4], index: 9, kind: output, shape index: {3}]  }
   0x1   :  { %v35_v0 = vld [vmem:[%s3854_s1 + $0x18] sm:$0xff]  ;;  %v34_v1 = vld [vmem:[%s3854_s1 + $0x10] sm:$0xff]  ;;  %v28_v2 = vld [vmem:[%s3853_s0] sm:$0xff] }
   0x2   :  { %2788 = vmatprep.subr.mxu1 %v35_v0  ;;  %v33_v3 = vld [vmem:[%s3854_s1 + $0x8] sm:$0xff]  ;;  %2796 = vmatprep.mubr.msk.f32.mxu1 %vm41_vm0, %v28_v2 }
   0x3   :  { %2789 = vmatpush3.msra.mxu1 %v35_v0 }
   0x4   :  { %15 = vsyncpa [#allocation6], 0  ;;  %2790 = vmatprep.subr.mxu1 %v34_v1  ;;  %v32_v4 = vld [vmem:[%s3854_s1] sm:$0xff]  ;;  %v3225_v5 = vld [vmem:[%s3853_s0 + $0x8] sm:$0xff]  ;;  %vm222_vm1 = vcmask 64512   ;;  %s3134_s26 = smov 88   ;;  %v1119_v61 = vlaneseq }
   0x5   :  { %2791 = vmatpush3.msra.mxu1 %v34_v1  ;;  %v30_v6 = vld [vmem:[%s3853_s0 + $0x10] sm:$0xff]  ;;  %v31_v7 = vld [vmem:[%s3853_s0 + $0x18] sm:$0xff]  ;;  %v2574_v8 = vld [vmem:[%s3855_s2] ss:$0 sm:$0xff]  ;;  %s3135_s27 = smov 96   ;;  %s3136_s28 = smov 80  }
   0x6   :  { %2792 = vmatprep.subr.mxu1 %v33_v3  ;;  %s3137_s29 = smov 120   ;;  %s3138_s30 = smov 72   ;;  %vm306_vm2 = vcmask 130048   ;;  %v3360_v62 = vshrl.u32 %v1119_v61, 7  ;;  %v3362_v63 = vand.u32 127, %v1119_v61  ;;  %vm420_vm9 = vcmask 261248  }
   0x7   :  { %2793 = vmatpush3.msra.mxu1 %v33_v3  ;;  %s3139_s10 = smov 112   ;;  %s3140_s11 = smov 104   ;;  %vm532_vm10 = vcmask 392448   ;;  %vm644_vm11 = vcmask 523648   ;;  %vm754_vm12 = vcmask 654848   ;;  %vm868_vm13 = vcmask 786048  }
   0x8   :  { %2794 = vmatprep.subr.mxu1 %v32_v4  ;;  %s3141_s12 = smov 48   ;;  %s3142_s13 = smov 16   ;;  %v1135_v0 = vadd.s32 120, %v3360_v62  ;;  %v3366_v1 = vshra.s32 %v3362_v63, 4  ;;  %v1134_v2 = vadd.s32 112, %v3360_v62  ;;  %v1133_v3 = vadd.s32 104, %v3360_v62 }
   0x9   :  { %2795 = vmatpush3.msra.mxu1 %v32_v4  ;;  %s3143_s14 = smov 32   ;;  %s3144_s15 = smov 64   ;;  %v1132_v4 = vadd.s32 96, %v3360_v62  ;;  %vm980_vm14 = vcmask 917248   ;;  %vm1092_vm15 = vcmask 1048448  }
   0xa   :  { %2797 = vmatmul.mubr.msk.f32.vlgmr.msra.gmra.mxu1 %vm41_vm0, %v3225_v5  ;;  %s3146_s16 = smov 56   ;;  %s3147_s17 = smov 40  }
   0xb   :  { %2799 = vmatprep.mubr.msk.f32.mxu1 %vm41_vm0, %v30_v6  ;;  %v1153_v6 = vshra.s32 %v1135_v0, 4 }
   0xd   :  { %vm1170_vm3 = vcmp.eq.s32.totalorder %v1153_v6, %v3366_v1 }
   0xe   :  { %2800 = vmatmul.mubr.msk.f32.gmra.mxu1 %vm41_vm0, %v31_v7  ;;  %v1152_v7 = vshra.s32 %v1134_v2, 4 }
  0x10   :  { %vm1169_vm4 = vcmp.eq.s32.totalorder %v1152_v7, %v3366_v1 }
  0xca   :  { %v2798_v9 = vpop.f32.mrf.mxu1 }
  0xcb   :  { %v3240_v10 = vadd.f32 %v2798_v9, %v2574_v8  ;;  %v1131_v9 = vadd.s32 88, %v3360_v62 }
  0xcc   :  { %v120_v11 = vpop.f32.mrf.mxu1 }
  0xcd   :  { %v3242_v12 = vadd.f32 %v2574_v8, %v120_v11  ;;  %327 = vrot.lane.b32.xlu1 %v3240_v10, %s3134_s26  ;;  %220 = vrot.lane.b32.xlu0 %v3240_v10, %s3135_s27  ;;  %v1150_v11 = vshra.s32 %v1132_v4, 4 }
  0xce   :  { %v2801_v13 = vpop.f32.mrf.mxu1 }
  0xcf   :  { %2806 = vmatprep.mubr.msk.f32.mxu1 %vm222_vm1, %v3242_v12  ;;  %v3265_v14 = vadd.f32 %v2801_v13, %v2574_v8  ;;  %v1130_v13 = vadd.s32 80, %v3360_v62  ;;  %vm1167_vm6 = vcmp.eq.s32.totalorder %v1150_v11, %v3366_v1 }
  0xd0   :  { %v130_v15 = vpop.f32.mrf.mxu1 }
  0xd1   :  { %439 = vrot.lane.b32.xlu1 %v3240_v10, %s3136_s28  ;;  %323 = vrot.lane.b32.xlu0 %v3240_v10, %s3137_s29  ;;  %v3280_v16 = vadd.f32 %v2574_v8, %v130_v15  ;;  %v1151_v8 = vshra.s32 %v1133_v3, 4  ;;  %v3145_v15 = vmov 1.0  }
  0xd3   :  { %vm1168_vm5 = vcmp.eq.s32.totalorder %v1151_v8, %v3366_v1 }
  0xd5   :  { %551 = vrot.lane.b32.xlu1 %v3240_v10, %s3138_s30  ;;  %435 = vrot.lane.b32.xlu0 %v3240_v10, %s3139_s10 }
  0xd9   :  { %547 = vrot.lane.b32.xlu1 %v3240_v10, %s3140_s11  ;;  %218 = vrot.lane.b32.xlu0 %v3242_v12, %s3135_s27 }
  0xdd   :  { %325 = vrot.lane.b32.xlu1 %v3242_v12, %s3134_s26  ;;  %321 = vrot.lane.b32.xlu0 %v3242_v12, %s3137_s29 }
  0xe1   :  { %549 = vrot.lane.b32.xlu1 %v3242_v12, %s3138_s30  ;;  %437 = vrot.lane.b32.xlu0 %v3242_v12, %s3136_s28 }
  0xe5   :  { %545 = vrot.lane.b32.xlu1 %v3242_v12, %s3140_s11  ;;  %433 = vrot.lane.b32.xlu0 %v3242_v12, %s3139_s10 }
  0xe9   :  { %661 = vrot.lane.b32.xlu1 %v3265_v14, %s3135_s27  ;;  %775 = vrot.lane.b32.xlu0 %v3265_v14, %s3134_s26 }
  0xed   :  { %771 = vrot.lane.b32.xlu1 %v3265_v14, %s3137_s29  ;;  %887 = vrot.lane.b32.xlu0 %v3265_v14, %s3136_s28 }
  0xf1   :  { %883 = vrot.lane.b32.xlu1 %v3265_v14, %s3139_s10  ;;  %999 = vrot.lane.b32.xlu0 %v3265_v14, %s3138_s30 }
  0xf5   :  { %773 = vrot.lane.b32.xlu1 %v3280_v16, %s3134_s26  ;;  %659 = vrot.lane.b32.xlu0 %v3280_v16, %s3135_s27  ;;  %s3148_s26 = smov 8  }
  0xf9   :  { %769 = vrot.lane.b32.xlu1 %v3280_v16, %s3137_s29  ;;  %885 = vrot.lane.b32.xlu0 %v3280_v16, %s3136_s28 }
  0xfd   :  { %997 = vrot.lane.b32.xlu1 %v3280_v16, %s3138_s30  ;;  %881 = vrot.lane.b32.xlu0 %v3280_v16, %s3139_s10  ;;  %s3149_s30 = smov 24  }
 0x101   :  { %995 = vrot.lane.b32.xlu1 %v3265_v14, %s3140_s11  ;;  %993 = vrot.lane.b32.xlu0 %v3280_v16, %s3140_s11 }
 0x13f   :  { %v328_v17 = vpop.permute.xlu1 %327  ;;  %v221_v18 = vpop.permute.xlu0 %220 }
 0x140   :  { %2802 = vmatprep.subr.msk.mxu1 %vm222_vm1, %v221_v18 }
 0x141   :  { %2803 = vmatpush3.xpose.msk.msra.mxu1 %vm222_vm1, %v221_v18  ;;  %v1148_v18 = vshra.s32 %v1130_v13, 4 }
 0x143   :  { %v440_v19 = vpop.permute.xlu1 %439  ;;  %v324_v20 = vpop.permute.xlu0 %323  ;;  %vm1165_vm8 = vcmp.eq.s32.totalorder %v1148_v18, %v3366_v1 }
 0x147   :  { %v552_v21 = vpop.permute.xlu1 %551  ;;  %v436_v22 = vpop.permute.xlu0 %435 }
 0x148   :  { %2823 = vmatprep.subr.msk.mxu0 %vm222_vm1, %v552_v21 }
 0x149   :  { %2824 = vmatpush3.xpose.msk.msra.mxu0 %vm222_vm1, %v552_v21 }
 0x14b   :  { %v548_v23 = vpop.permute.xlu1 %547  ;;  %v219_v24 = vpop.permute.xlu0 %218 }
 0x14c   :  { %2804 = vmatprep.subr.msk.mxu1 %vm222_vm1, %v219_v24 }
 0x14d   :  { %2805 = vmatpush3.xpose.msk.msra.mxu1 %vm222_vm1, %v219_v24 }
 0x14e   :  { %2809 = vmatprep.subr.msk.mxu1 %vm222_vm1, %v328_v17 }
 0x14f   :  { %v326_v25 = vpop.permute.xlu1 %325  ;;  %v322_v26 = vpop.permute.xlu0 %321 }
 0x150   :  { %2807 = vmatmul.mubr.msk.f32.vlgmr.msra.gmra.mxu1 %vm222_vm1, %v3240_v10 }
 0x151   :  { %2810 = vmatpush3.xpose.msk.msra.mxu1 %vm222_vm1, %v328_v17  ;;  %2813 = vmatprep.mubr.msk.f32.mxu1 %vm222_vm1, %v322_v26  ;;  %v1149_v17 = vshra.s32 %v1131_v9, 4 }
 0x152   :  { %2811 = vmatprep.subr.msk.mxu1 %vm222_vm1, %v326_v25 }
 0x153   :  { %v550_v27 = vpop.permute.xlu1 %549  ;;  %v438_v28 = vpop.permute.xlu0 %437  ;;  %vm1166_vm7 = vcmp.eq.s32.totalorder %v1149_v17, %v3366_v1 }
 0x154   :  { %2825 = vmatprep.subr.msk.mxu0 %vm222_vm1, %v550_v27 }
 0x155   :  { %2812 = vmatpush3.xpose.msk.msra.mxu1 %vm222_vm1, %v326_v25  ;;  %2826 = vmatpush3.xpose.msk.msra.mxu0 %vm222_vm1, %v550_v27 }
 0x156   :  { %2816 = vmatprep.subr.msk.mxu1 %vm222_vm1, %v440_v19 }
 0x157   :  { %v546_v29 = vpop.permute.xlu1 %545  ;;  %v434_v30 = vpop.permute.xlu0 %433 }
 0x158   :  { %2814 = vmatmul.mubr.msk.f32.vlgmr.msra.gmra.mxu1 %vm222_vm1, %v324_v20  ;;  %2827 = vmatprep.mubr.msk.f32.mxu0 %vm222_vm1, %v546_v29 }
 0x159   :  { %2817 = vmatpush3.xpose.msk.msra.mxu1 %vm222_vm1, %v440_v19  ;;  %2820 = vmatprep.mubr.msk.f32.mxu1 %vm222_vm1, %v434_v30 }
 0x15a   :  { %2828 = vmatmul.mubr.msk.f32.vlgmr.msra.gmra.mxu0 %vm222_vm1, %v548_v23  ;;  %2818 = vmatprep.subr.msk.mxu1 %vm222_vm1, %v438_v28 }
 0x15b   :  { %v662_v31 = vpop.permute.xlu1 %661  ;;  %v776_v32 = vpop.permute.xlu0 %775 }
 0x15c   :  { %2837 = vmatprep.subr.msk.mxu0 %vm222_vm1, %v776_v32 }
 0x15d   :  { %2819 = vmatpush3.xpose.msk.msra.mxu1 %vm222_vm1, %v438_v28  ;;  %2838 = vmatpush3.xpose.msk.msra.mxu0 %vm222_vm1, %v776_v32 }
 0x15e   :  { %2830 = vmatprep.subr.msk.mxu1 %vm222_vm1, %v662_v31 }
 0x15f   :  { %v772_v33 = vpop.permute.xlu1 %771  ;;  %v888_v34 = vpop.permute.xlu0 %887 }
 0x160   :  { %2821 = vmatmul.mubr.msk.f32.vlgmr.msra.gmra.mxu1 %vm222_vm1, %v436_v22 }
 0x161   :  { %2831 = vmatpush3.xpose.msk.msra.mxu1 %vm222_vm1, %v662_v31  ;;  %2834 = vmatprep.mubr.msk.f32.mxu1 %vm222_vm1, %v3280_v16 }
 0x163   :  { %v884_v35 = vpop.permute.xlu1 %883  ;;  %v1000_v36 = vpop.permute.xlu0 %999 }
 0x167   :  { %v774_v37 = vpop.permute.xlu1 %773  ;;  %v660_v38 = vpop.permute.xlu0 %659 }
 0x168   :  { %2832 = vmatprep.subr.msk.mxu1 %vm222_vm1, %v660_v38  ;;  %2839 = vmatprep.subr.msk.mxu0 %vm222_vm1, %v774_v37 }
 0x169   :  { %2833 = vmatpush3.xpose.msk.msra.mxu1 %vm222_vm1, %v660_v38  ;;  %2840 = vmatpush3.xpose.msk.msra.mxu0 %vm222_vm1, %v774_v37  ;;  %v1129_v37 = vadd.s32 72, %v3360_v62 }
 0x16a   :  { %2844 = vmatprep.subr.msk.mxu1 %vm222_vm1, %v888_v34  ;;  %2851 = vmatprep.subr.msk.mxu0 %vm222_vm1, %v1000_v36 }
 0x16b   :  { %v770_v39 = vpop.permute.xlu1 %769  ;;  %v886_v40 = vpop.permute.xlu0 %885  ;;  %v1147_v38 = vshra.s32 %v1129_v37, 4 }
 0x16c   :  { %2835 = vmatmul.mubr.msk.f32.vlgmr.msra.gmra.mxu1 %vm222_vm1, %v3265_v14  ;;  %2841 = vmatprep.mubr.msk.f32.mxu0 %vm222_vm1, %v770_v39  ;;  %v1128_v39 = vadd.s32 64, %v3360_v62 }
 0x16d   :  { %2842 = vmatmul.mubr.msk.f32.vlgmr.msra.gmra.mxu0 %vm222_vm1, %v772_v33  ;;  %2845 = vmatpush3.xpose.msk.msra.mxu1 %vm222_vm1, %v888_v34 }
 0x16e   :  { %2852 = vmatpush3.xpose.msk.msra.mxu0 %vm222_vm1, %v1000_v36  ;;  %2846 = vmatprep.subr.msk.mxu1 %vm222_vm1, %v886_v40 }
 0x16f   :  { %v998_v41 = vpop.permute.xlu1 %997  ;;  %v882_v42 = vpop.permute.xlu0 %881 }
 0x170   :  { %2848 = vmatprep.mubr.msk.f32.mxu1 %vm222_vm1, %v882_v42  ;;  %2853 = vmatprep.subr.msk.mxu0 %vm222_vm1, %v998_v41 }
 0x171   :  { %2847 = vmatpush3.xpose.msk.msra.mxu1 %vm222_vm1, %v886_v40  ;;  %v1146_v40 = vshra.s32 %v1128_v39, 4 }
 0x172   :  { %2854 = vmatpush3.xpose.msk.msra.mxu0 %vm222_vm1, %v998_v41  ;;  %2858 = vmatprep.subr.msk.mxu1 %vm1170_vm3, %v3145_v15  ;;  %v1127_v41 = vadd.s32 56, %v3360_v62 }
 0x173   :  { %v996_v43 = vpop.permute.xlu1 %995  ;;  %v994_v44 = vpop.permute.xlu0 %993 }
 0x174   :  { %2849 = vmatmul.mubr.msk.f32.vlgmr.msra.gmra.mxu1 %vm222_vm1, %v884_v35  ;;  %2855 = vmatprep.mubr.msk.f32.mxu0 %vm222_vm1, %v994_v44  ;;  %v1145_v42 = vshra.s32 %v1127_v41, 4 }
 0x175   :  { %2856 = vmatmul.mubr.msk.f32.vlgmr.msra.gmra.mxu0 %vm222_vm1, %v996_v43  ;;  %2859 = vmatpush3.msk.msra.mxu1 %vm1170_vm3, %v3145_v15  ;;  %vm1164_vm3 = vcmp.eq.s32.totalorder %v1147_v38, %v3366_v1  ;;  %v1126_v43 = vadd.s32 48, %v3360_v62 }
 0x176   :  { %2860 = vmatprep.subr.msk.mxu1 %vm1169_vm4, %v3145_v15 }
 0x177   :  { %2861 = vmatpush3.msk.msra.mxu1 %vm1169_vm4, %v3145_v15  ;;  %vm1163_vm4 = vcmp.eq.s32.totalorder %v1146_v40, %v3366_v1  ;;  %v1144_v44 = vshra.s32 %v1126_v43, 4 }
 0x178   :  { %2862 = vmatprep.subr.msk.mxu1 %vm1168_vm5, %v3145_v15 }
 0x179   :  { %2863 = vmatpush3.msk.msra.mxu1 %vm1168_vm5, %v3145_v15  ;;  %vm1162_vm5 = vcmp.eq.s32.totalorder %v1145_v42, %v3366_v1 }
 0x17a   :  { %2864 = vmatprep.subr.msk.mxu1 %vm1167_vm6, %v3145_v15 }
 0x17b   :  { %2865 = vmatpush3.msk.msra.mxu1 %vm1167_vm6, %v3145_v15  ;;  %vm1161_vm6 = vcmp.eq.s32.totalorder %v1144_v44, %v3366_v1 }
 0x17c   :  { %2866 = vmatprep.subr.msk.mxu1 %vm1166_vm7, %v3145_v15 }
 0x17d   :  { %2867 = vmatpush3.msk.msra.mxu1 %vm1166_vm7, %v3145_v15 }
 0x17e   :  { %2868 = vmatprep.subr.msk.mxu1 %vm1165_vm8, %v3145_v15 }
 0x17f   :  { %2869 = vmatpush3.msk.msra.mxu1 %vm1165_vm8, %v3145_v15 }
 0x180   :  { %2870 = vmatprep.subr.msk.mxu1 %vm1164_vm3, %v3145_v15 }
 0x181   :  { %2871 = vmatpush3.msk.msra.mxu1 %vm1164_vm3, %v3145_v15 }
 0x182   :  { %2872 = vmatprep.subr.msk.mxu1 %vm1163_vm4, %v3145_v15 }
 0x183   :  { %2873 = vmatpush3.msk.msra.mxu1 %vm1163_vm4, %v3145_v15 }
 0x184   :  { %2874 = vmatprep.subr.msk.mxu1 %vm1162_vm5, %v3145_v15 }
 0x185   :  { %2875 = vmatpush3.msk.msra.mxu1 %vm1162_vm5, %v3145_v15 }
 0x186   :  { %2876 = vmatprep.subr.msk.mxu1 %vm1161_vm6, %v3145_v15 }
 0x187   :  { %2877 = vmatpush3.msk.msra.mxu1 %vm1161_vm6, %v3145_v15 }
 0x210   :  { %v2808_v45 = vpop.f32.mrf.mxu1 }
 0x211   :  { %308 = vst.msk [vmem:[#allocation2 + $0x8] sm:$0xff] %vm306_vm2, %v2808_v45  ;;  %v1125_v45 = vadd.s32 40, %v3360_v62 }
 0x212   :  { %v297_v46 = vpop.f32.mrf.mxu1 }
 0x213   :  { %307 = vst.msk [vmem:[#allocation2] sm:$0xff] %vm306_vm2, %v297_v46  ;;  %v1143_v46 = vshra.s32 %v1125_v45, 4  ;;  %v2080_v45 = vld [vmem:[%s3856_s3 + $0x18] sm:$0xff] }
 0x215   :  { %vm1160_vm7 = vcmp.eq.s32.totalorder %v1143_v46, %v3366_v1  ;;  %v2079_v46 = vld [vmem:[%s3856_s3 + $0x10] sm:$0xff] }
 0x216   :  { %2878 = vmatprep.subr.msk.mxu1 %vm1160_vm7, %v3145_v15 }
 0x217   :  { %2879 = vmatpush3.msk.msra.mxu1 %vm1160_vm7, %v3145_v15  ;;  %vm1482_vm7 = vcmask 130112  }
 0x218   :  { %v2815_v48 = vpop.f32.mrf.mxu1 }
 0x21a   :  { %v2829_v47 = vpop.f32.mrf.mxu0  ;;  %v403_v50 = vpop.f32.mrf.mxu1 }
 0x21b   :  { %640 = vrot.lane.b32.xlu1 %v2829_v47, %s3141_s12  ;;  %v1124_v47 = vadd.s32 32, %v3360_v62 }
 0x21c   :  { %v627_v49 = vpop.f32.mrf.mxu0 }
 0x21d   :  { %638 = vrot.lane.b32.xlu0 %v627_v49, %s3141_s12  ;;  %v1123_v49 = vadd.s32 24, %v3360_v62 }
 0x21f   :  { %416 = vrot.lane.b32.xlu1 %v2815_v48, %s3142_s13  ;;  %v1142_v48 = vshra.s32 %v1124_v47, 4 }
 0x220   :  { %v2822_v51 = vpop.f32.mrf.mxu1 }
 0x221   :  { %414 = vrot.lane.b32.xlu0 %v403_v50, %s3142_s13  ;;  %vm1159_vm8 = vcmp.eq.s32.totalorder %v1142_v48, %v3366_v1  ;;  %v1141_v50 = vshra.s32 %v1123_v49, 4  ;;  %v2078_v48 = vld [vmem:[%s3856_s3 + $0x8] sm:$0xff] }
 0x222   :  { %v515_v53 = vpop.f32.mrf.mxu1  ;;  %2880 = vmatprep.subr.msk.mxu1 %vm1159_vm8, %v3145_v15 }
 0x223   :  { %2881 = vmatpush3.msk.msra.mxu1 %vm1159_vm8, %v3145_v15  ;;  %vm1158_vm3 = vcmp.eq.s32.totalorder %v1141_v50, %v3366_v1  ;;  %vm1682_vm8 = vcmask 261312  }
 0x224   :  { %2882 = vmatprep.subr.msk.mxu1 %vm1158_vm3, %v3145_v15 }
 0x225   :  { %2883 = vmatpush3.msk.msra.mxu1 %vm1158_vm3, %v3145_v15 }
 0x22c   :  { %v2836_v55 = vpop.f32.mrf.mxu1 }
 0x22d   :  { %v2843_v52 = vpop.f32.mrf.mxu0 }
 0x22e   :  { %864 = vrot.lane.b32.xlu1 %v2843_v52, %s3136_s28  ;;  %v737_v56 = vpop.f32.mrf.mxu1 }
 0x22f   :  { %v851_v54 = vpop.f32.mrf.mxu0 }
 0x230   :  { %862 = vrot.lane.b32.xlu0 %v851_v54, %s3136_s28 }
 0x232   :  { %528 = vrot.lane.b32.xlu1 %v2822_v51, %s3143_s14  ;;  %v1122_v51 = vadd.s32 16, %v3360_v62 }
 0x234   :  { %526 = vrot.lane.b32.xlu0 %v515_v53, %s3143_s14  ;;  %v2850_v57 = vpop.f32.mrf.mxu1  ;;  %v1140_v52 = vshra.s32 %v1122_v51, 4  ;;  %v3443_v53 = vadd.s32 8, %v3360_v62  ;;  %v2077_v51 = vld [vmem:[%s3856_s3] sm:$0xff] }
 0x235   :  { %v2857_v58 = vpop.f32.mrf.mxu0 }
 0x236   :  { %750 = vrot.lane.b32.xlu1 %v2836_v55, %s3144_s15  ;;  %v963_v59 = vpop.f32.mrf.mxu1  ;;  %vm1157_vm4 = vcmp.eq.s32.totalorder %v1140_v52, %v3366_v1  ;;  %v1139_v54 = vshra.s32 %v3443_v53, 4  ;;  %v1138_v55 = vshra.s32 %v3360_v62, 4 }
 0x237   :  { %v1075_v60 = vpop.f32.mrf.mxu0  ;;  %2884 = vmatprep.subr.msk.mxu1 %vm1157_vm4, %v3145_v15 }
 0x238   :  { %748 = vrot.lane.b32.xlu0 %v737_v56, %s3144_s15  ;;  %2885 = vmatpush3.msk.msra.mxu1 %vm1157_vm4, %v3145_v15  ;;  %vm1156_vm5 = vcmp.eq.s32.totalorder %v1139_v54, %v3366_v1  ;;  %vm1155_vm6 = vcmp.eq.s32.totalorder %v1138_v55, %v3366_v1 }
 0x239   :  { %2886 = vmatprep.subr.msk.mxu1 %vm1156_vm5, %v3145_v15 }
 0x23a   :  { %976 = vrot.lane.b32.xlu1 %v2850_v57, %s3135_s27  ;;  %2887 = vmatpush3.msk.msra.mxu1 %vm1156_vm5, %v3145_v15 }
 0x23b   :  { %2888 = vmatprep.subr.msk.mxu1 %vm1155_vm6, %v3145_v15 }
 0x23c   :  { %974 = vrot.lane.b32.xlu0 %v963_v59, %s3135_s27  ;;  %2889 = vmatpush3.msk.msra.mxu1 %vm1155_vm6, %v3145_v15 }
 0x23e   :  { %1088 = vrot.lane.b32.xlu1 %v2857_v58, %s3139_s10 }
 0x240   :  { %1086 = vrot.lane.b32.xlu0 %v1075_v60, %s3139_s10 }
 0x28d   :  { %v641_v19 = vpop.permute.xlu1 %640 }
 0x28f   :  { %v639_v20 = vpop.permute.xlu0 %638 }
 0x291   :  { %v417_v21 = vpop.permute.xlu1 %416 }
 0x292   :  { %422 = vst.msk [vmem:[#allocation2 + $0x8] sm:$0xff] %vm420_vm9, %v417_v21 }
 0x293   :  { %v415_v22 = vpop.permute.xlu0 %414 }
 0x294   :  { %421 = vst.msk [vmem:[#allocation2] sm:$0xff] %vm420_vm9, %v415_v22 }
 0x2a0   :  { %v865_v23 = vpop.permute.xlu1 %864 }
 0x2a2   :  { %v863_v24 = vpop.permute.xlu0 %862 }
 0x2a4   :  { %v529_v25 = vpop.permute.xlu1 %528 }
 0x2a5   :  { %534 = vst.msk [vmem:[#allocation2 + $0x8] sm:$0xff] %vm532_vm10, %v529_v25 }
 0x2a6   :  { %v527_v26 = vpop.permute.xlu0 %526  ;;  %646 = vst.msk [vmem:[#allocation2 + $0x8] sm:$0xff] %vm644_vm11, %v641_v19 }
 0x2a7   :  { %533 = vst.msk [vmem:[#allocation2] sm:$0xff] %vm532_vm10, %v527_v26 }
 0x2a8   :  { %v751_v27 = vpop.permute.xlu1 %750  ;;  %645 = vst.msk [vmem:[#allocation2] sm:$0xff] %vm644_vm11, %v639_v20 }
 0x2a9   :  { %756 = vst.msk [vmem:[#allocation2 + $0x8] sm:$0xff] %vm754_vm12, %v751_v27 }
 0x2aa   :  { %v749_v28 = vpop.permute.xlu0 %748  ;;  %870 = vst.msk [vmem:[#allocation2 + $0x8] sm:$0xff] %vm868_vm13, %v865_v23 }
 0x2ab   :  { %755 = vst.msk [vmem:[#allocation2] sm:$0xff] %vm754_vm12, %v749_v28 }
 0x2ac   :  { %v977_v29 = vpop.permute.xlu1 %976  ;;  %869 = vst.msk [vmem:[#allocation2] sm:$0xff] %vm868_vm13, %v863_v24 }
 0x2ad   :  { %982 = vst.msk [vmem:[#allocation2 + $0x8] sm:$0xff] %vm980_vm14, %v977_v29 }
 0x2ae   :  { %v975_v30 = vpop.permute.xlu0 %974 }
 0x2af   :  { %981 = vst.msk [vmem:[#allocation2] sm:$0xff] %vm980_vm14, %v975_v30 }
 0x2b0   :  { %v1089_v31 = vpop.permute.xlu1 %1088 }
 0x2b1   :  { %1094 = vst.msk [vmem:[#allocation2 + $0x8] sm:$0xff] %vm1092_vm15, %v1089_v31 }
 0x2b2   :  { %v1087_v32 = vpop.permute.xlu0 %1086 }
 0x2b3   :  { %1093 = vst.msk [vmem:[#allocation2] sm:$0xff] %vm1092_vm15, %v1087_v32 }
 0x2b8   :  { %v1106_v33 = vld [vmem:[#allocation2 + $0x8] sm:$0xff] }
 0x2b9   :  { %v3405_v34 = vmul.f32 0.35355338, %v1106_v33 }
 0x2ba   :  { %v1105_v35 = vld [vmem:[#allocation2] sm:$0xff] }
 0x2bb   :  { %1111 = vmax.xlane.f32.xlu1 %v3405_v34  ;;  %v3408_v36 = vmul.f32 0.35355338, %v1105_v35 }
 0x2bd   :  { %1109 = vmax.xlane.f32.xlu0 %v3408_v36 }
 0x2cc   :  { %1296 = vrot.lane.b32.xlu1 %v3242_v12, %s3144_s15 }
 0x2d0   :  { %1389 = vrot.lane.b32.xlu1 %v3242_v12, %s3146_s16 }
 0x2d3   :  { %1298 = vrot.lane.b32.xlu0 %v3240_v10, %s3144_s15 }
 0x2d4   :  { %1489 = vrot.lane.b32.xlu1 %v3242_v12, %s3141_s12 }
 0x2d7   :  { %1391 = vrot.lane.b32.xlu0 %v3240_v10, %s3146_s16 }
 0x2d8   :  { %1589 = vrot.lane.b32.xlu1 %v3242_v12, %s3147_s17 }
 0x2db   :  { %1491 = vrot.lane.b32.xlu0 %v3240_v10, %s3141_s12 }
 0x2dc   :  { %1689 = vrot.lane.b32.xlu1 %v3280_v16, %s3144_s15 }
 0x2df   :  { %1591 = vrot.lane.b32.xlu0 %v3240_v10, %s3147_s17 }
 0x2e0   :  { %1780 = vrot.lane.b32.xlu1 %v3280_v16, %s3146_s16 }
 0x2e3   :  { %1691 = vrot.lane.b32.xlu0 %v3265_v14, %s3144_s15 }
 0x2e4   :  { %1980 = vrot.lane.b32.xlu1 %v3265_v14, %s3147_s17 }
 0x2e7   :  { %1782 = vrot.lane.b32.xlu0 %v3265_v14, %s3146_s16 }
 0x2eb   :  { %1881 = vrot.lane.b32.xlu0 %v3265_v14, %s3141_s12 }
 0x2ef   :  { %1879 = vrot.lane.b32.xlu0 %v3280_v16, %s3141_s12 }
 0x344   :  { %v1112_v56 = vpop.xlane.xlu1 %1111 }
 0x345   :  { %v1114_v57 = vsub.f32 %v3405_v34, %v1112_v56 }
 0x346   :  { %v1110_v58 = vpop.xlane.xlu0 %1109 }
 0x347   :  { %v1113_v59 = vsub.f32 %v3408_v36, %v1110_v58  ;;  %v1117_v60 = vmul.f32 1.442695, %v1114_v57 }
 0x348   :  { %v1297_v61 = vpop.permute.xlu1 %1296 }
 0x349   :  { %v1115_v0 = vmul.f32 1.442695, %v1113_v59 }
 0x34a   :  { %v1299_v1 = vpop.permute.xlu0 %1298 }
 0x34b   :  { %3049 = vpow2.f32 %v1115_v0  ;;  %2893 = vmatprep.subr.mxu0 %v1299_v1 }
 0x34c   :  { %3051 = vpow2.f32 %v1117_v60  ;;  %v1390_v2 = vpop.permute.xlu1 %1389  ;;  %2894 = vmatpush3.msra.mxu0 %v1299_v1 }
 0x34d   :  { %2895 = vmatprep.subr.mxu0 %v1297_v61 }
 0x34e   :  { %2896 = vmatpush3.msra.mxu0 %v1297_v61  ;;  %v1392_v3 = vpop.permute.xlu0 %1391 }
 0x34f   :  { %2900 = vmatprep.subr.mxu0 %v1392_v3 }
 0x350   :  { %v1490_v4 = vpop.permute.xlu1 %1489 }
 0x352   :  { %v1492_v22 = vpop.permute.xlu0 %1491 }
 0x354   :  { %v1590_v6 = vpop.permute.xlu1 %1589 }
 0x356   :  { %v1592_v23 = vpop.permute.xlu0 %1591 }
 0x358   :  { %v3050_v7 = vpop.eup %3049  ;;  %v3486_v8 = vpop.permute.xlu1 %1689 }
 0x359   :  { %v3052_v9 = vpop.eup %3051  ;;  %2890 = vmatprep.mubr.f32.mxu1 %v3050_v7 }
 0x35a   :  { %2891 = vmatmul.mubr.f32.vlgmr.msra.gmra.mxu1 %v3052_v9  ;;  %v1692_v24 = vpop.permute.xlu0 %1691 }
 0x35c   :  { %v3488_v11 = vpop.permute.xlu1 %1780 }
 0x35e   :  { %v1783_v25 = vpop.permute.xlu0 %1782 }
 0x360   :  { %v1981_v13 = vpop.permute.xlu1 %1980 }
 0x361   :  { %2942 = vmatprep.subr.mxu1 %v1981_v13 }
 0x362   :  { %2943 = vmatpush3.msra.mxu1 %v1981_v13  ;;  %v1882_v26 = vpop.permute.xlu0 %1881 }
 0x366   :  { %v1880_v27 = vpop.permute.xlu0 %1879 }
 0x41a   :  { %v2892_v15 = vpop.f32.mrf.mxu1 }
 0x41b   :  { %3053 = vrcp.f32 %v2892_v15 }
 0x41c   :  { %v1253_v17 = vpop.f32.mrf.mxu1 }
 0x41d   :  { %3055 = vrcp.f32 %v1253_v17 }
 0x428   :  { %v3054_v18 = vpop.eup %3053 }
 0x429   :  { %v1265_v19 = vmul.f32 %v3054_v18, %v3052_v9 }
 0x42a   :  { %v3056_v20 = vpop.eup %3055 }
 0x42b   :  { %1267 = vst [vmem:[%s3860_s7 + $0x8] sm:$0xff] %v1265_v19  ;;  %v1264_v21 = vmul.f32 %v3056_v20, %v3050_v7  ;;  %1387 = vrot.lane.b32.xlu1 %v1265_v19, %s3139_s10 }
 0x42d   :  { %1266 = vst [vmem:[%s3860_s7] sm:$0xff] %v1264_v21  ;;  %1385 = vrot.lane.b32.xlu0 %v1264_v21, %s3139_s10  ;;  %2897 = vmatprep.mubr.msk.f32.mxu0 %vm306_vm2, %v1264_v21 }
 0x42e   :  { %2898 = vmatmul.mubr.msk.f32.vlgmr.msra.gmra.mxu0 %vm306_vm2, %v1265_v19 }
 0x42f   :  { %2901 = vmatpush3.msra.mxu0 %v1392_v3  ;;  %1487 = vrot.lane.b32.xlu1 %v1265_v19, %s3135_s27 }
 0x430   :  { %2902 = vmatprep.subr.mxu0 %v1390_v2 }
 0x431   :  { %2903 = vmatpush3.msra.mxu0 %v1390_v2  ;;  %1485 = vrot.lane.b32.xlu0 %v1264_v21, %s3135_s27 }
 0x432   :  { %2907 = vmatprep.subr.mxu0 %v1492_v22 }
 0x433   :  { %1587 = vrot.lane.b32.xlu1 %v1265_v19, %s3136_s28 }
 0x435   :  { %1585 = vrot.lane.b32.xlu0 %v1264_v21, %s3136_s28 }
 0x437   :  { %1687 = vrot.lane.b32.xlu1 %v1265_v19, %s3144_s15 }
 0x439   :  { %1685 = vrot.lane.b32.xlu0 %v1264_v21, %s3144_s15 }
 0x43b   :  { %1778 = vrot.lane.b32.xlu1 %v1265_v19, %s3141_s12 }
 0x43d   :  { %1776 = vrot.lane.b32.xlu0 %v1264_v21, %s3141_s12 }
 0x43f   :  { %1877 = vrot.lane.b32.xlu1 %v1265_v19, %s3143_s14 }
 0x441   :  { %1978 = vrot.lane.b32.xlu0 %v3280_v16, %s3147_s17 }
 0x443   :  { %1875 = vrot.lane.b32.xlu1 %v1264_v21, %s3143_s14 }
 0x445   :  { %1974 = vrot.lane.b32.xlu0 %v1264_v21, %s3142_s13 }
 0x447   :  { %1976 = vrot.lane.b32.xlu1 %v1265_v19, %s3142_s13 }
 0x49d   :  { %v1388_v28 = vpop.permute.xlu1 %1387 }
 0x49f   :  { %v1386_v29 = vpop.permute.xlu0 %1385 }
 0x4a0   :  { %2904 = vmatprep.mubr.msk.f32.mxu0 %vm306_vm2, %v1386_v29 }
 0x4a1   :  { %v1488_v30 = vpop.permute.xlu1 %1487  ;;  %2905 = vmatmul.mubr.msk.f32.vlgmr.msra.gmra.mxu0 %vm306_vm2, %v1388_v28 }
 0x4a2   :  { %2908 = vmatpush3.msra.mxu0 %v1492_v22 }
 0x4a3   :  { %2909 = vmatprep.subr.mxu0 %v1490_v4  ;;  %v1486_v31 = vpop.permute.xlu0 %1485 }
 0x4a4   :  { %2910 = vmatpush3.msra.mxu0 %v1490_v4  ;;  %2911 = vmatprep.mubr.msk.f32.mxu0 %vm306_vm2, %v1486_v31 }
 0x4a5   :  { %2914 = vmatprep.subr.mxu0 %v1592_v23  ;;  %v1588_v32 = vpop.permute.xlu1 %1587  ;;  %2912 = vmatmul.mubr.msk.f32.vlgmr.msra.gmra.mxu0 %vm306_vm2, %v1488_v30  ;;  %v3109_v30 = vld [vmem:[%s3853_s0] sm:$0xff] }
 0x4a6   :  { %2915 = vmatpush3.msra.mxu0 %v1592_v23  ;;  %v3575_v23 = vld [vmem:[%s3855_s2 + $0x1] ss:$0 sm:$0xff] }
 0x4a7   :  { %2916 = vmatprep.subr.mxu0 %v1590_v6  ;;  %v1586_v33 = vpop.permute.xlu0 %1585 }
 0x4a8   :  { %2917 = vmatpush3.msra.mxu0 %v1590_v6  ;;  %2918 = vmatprep.mubr.msk.f32.mxu0 %vm306_vm2, %v1586_v33 }
 0x4a9   :  { %2921 = vmatprep.subr.mxu0 %v1692_v24  ;;  %v1688_v34 = vpop.permute.xlu1 %1687  ;;  %2919 = vmatmul.mubr.msk.f32.vlgmr.msra.gmra.mxu0 %vm306_vm2, %v1588_v32 }
 0x4aa   :  { %2922 = vmatpush3.msra.mxu0 %v1692_v24 }
 0x4ab   :  { %2923 = vmatprep.subr.mxu0 %v3486_v8  ;;  %v1686_v35 = vpop.permute.xlu0 %1685 }
 0x4ac   :  { %2924 = vmatpush3.msra.mxu0 %v3486_v8  ;;  %2925 = vmatprep.mubr.msk.f32.mxu0 %vm306_vm2, %v1686_v35 }
 0x4ad   :  { %2928 = vmatprep.subr.mxu0 %v1783_v25  ;;  %v1779_v36 = vpop.permute.xlu1 %1778  ;;  %2926 = vmatmul.mubr.msk.f32.vlgmr.msra.gmra.mxu0 %vm306_vm2, %v1688_v34 }
 0x4ae   :  { %2929 = vmatpush3.msra.mxu0 %v1783_v25 }
 0x4af   :  { %2930 = vmatprep.subr.mxu0 %v3488_v11  ;;  %v1777_v37 = vpop.permute.xlu0 %1776 }
 0x4b0   :  { %2931 = vmatpush3.msra.mxu0 %v3488_v11  ;;  %2932 = vmatprep.mubr.msk.f32.mxu0 %vm306_vm2, %v1777_v37 }
 0x4b1   :  { %2935 = vmatprep.subr.mxu0 %v1882_v26  ;;  %v1878_v38 = vpop.permute.xlu1 %1877  ;;  %2933 = vmatmul.mubr.msk.f32.vlgmr.msra.gmra.mxu0 %vm306_vm2, %v1779_v36 }
 0x4b2   :  { %2936 = vmatpush3.msra.mxu0 %v1882_v26 }
 0x4b3   :  { %2937 = vmatprep.subr.mxu0 %v1880_v27  ;;  %v1979_v39 = vpop.permute.xlu0 %1978 }
 0x4b4   :  { %2938 = vmatpush3.msra.mxu0 %v1880_v27  ;;  %2944 = vmatprep.subr.mxu1 %v1979_v39 }
 0x4b5   :  { %v1876_v40 = vpop.permute.xlu1 %1875  ;;  %2945 = vmatpush3.msra.mxu1 %v1979_v39  ;;  %2949 = vmatprep.subr.mxu0 %v2080_v45  ;;  %v3111_v39 = vld [vmem:[%s3853_s0 + $0x18] sm:$0xff] }
 0x4b6   :  { %2939 = vmatprep.mubr.msk.f32.mxu0 %vm306_vm2, %v1876_v40 }
 0x4b7   :  { %2940 = vmatmul.mubr.msk.f32.vlgmr.msra.gmra.mxu0 %vm306_vm2, %v1878_v38  ;;  %v1975_v41 = vpop.permute.xlu0 %1974 }
 0x4b8   :  { %2946 = vmatprep.mubr.msk.f32.mxu1 %vm306_vm2, %v1975_v41  ;;  %2950 = vmatpush3.msra.mxu0 %v2080_v45  ;;  %v2579_v45 = vmul.f32 -5.0, %v3242_v12 }
 0x4b9   :  { %v1977_v42 = vpop.permute.xlu1 %1976  ;;  %2951 = vmatprep.subr.mxu0 %v2079_v46 }
 0x4ba   :  { %2947 = vmatmul.mubr.msk.f32.vlgmr.msra.gmra.mxu1 %vm306_vm2, %v1977_v42  ;;  %2952 = vmatpush3.msra.mxu0 %v2079_v46  ;;  %v3150_v42 = vmov 96   ;;  %v147_v46 = vmul.f32 1.442695, %v2579_v45  ;;  %v2255_v45 = vld [vmem:[%s3857_s4] sm:$0xff] }
 0x4bb   :  { %2953 = vmatprep.subr.mxu0 %v2078_v48  ;;  %3038 = vset.pattern.permute.xlu1 %v3150_v42 }
 0x4bc   :  { %2954 = vmatpush3.msra.mxu0 %v2078_v48  ;;  %3037 = vset.pattern.permute.xlu0 %v3150_v42 }
 0x4bd   :  { %2955 = vmatprep.subr.mxu0 %v2077_v51 }
 0x4be   :  { %2956 = vmatpush3.msra.mxu0 %v2077_v51 }
 0x4ee   :  { %v2899_v43 = vpop.f32.mrf.mxu0 }
 0x4ef   :  { %1384 = vst.msk [vmem:[#allocation4 + $0x8] sm:$0xff] %vm222_vm1, %v2899_v43  ;;  %v2580_v43 = vmul.f32 -5.0, %v3240_v10 }
 0x4f0   :  { %v1374_v44 = vpop.f32.mrf.mxu0 }
 0x4f1   :  { %1383 = vst.msk [vmem:[#allocation4] sm:$0xff] %vm222_vm1, %v1374_v44  ;;  %v149_v44 = vmul.f32 1.442695, %v2580_v43  ;;  %v2256_v43 = vld [vmem:[%s3857_s4 + $0x8] sm:$0xff] }
 0x4f3   :  { %3057 = vpow2.f32 %v149_v44 }
 0x4f4   :  { %3059 = vpow2.f32 %v147_v46 }
 0x561   :  { %v2906_v47 = vpop.f32.mrf.mxu0 }
 0x562   :  { %1478 = vrot.lane.b32.xlu1 %v2906_v47, %s3148_s26  ;;  %v2582_v47 = vmul.f32 -5.0, %v3265_v14 }
 0x563   :  { %v1465_v49 = vpop.f32.mrf.mxu0 }
 0x564   :  { %1476 = vrot.lane.b32.xlu0 %v1465_v49, %s3148_s26  ;;  %v153_v48 = vmul.f32 1.442695, %v2582_v47  ;;  %v3058_v49 = vpop.eup %3057 }
 0x565   :  { %v2913_v50 = vpop.f32.mrf.mxu0  ;;  %v3060_v51 = vpop.eup %3059 }
 0x566   :  { %1578 = vrot.lane.b32.xlu1 %v2913_v50, %s3142_s13  ;;  %3061 = vpow2.f32 %v153_v48  ;;  %v156_v50 = vadd.f32 1.0, %v3058_v49  ;;  %v3151_v48 = vmov 97  }
 0x567   :  { %v1565_v52 = vpop.f32.mrf.mxu0 }
 0x568   :  { %1576 = vrot.lane.b32.xlu0 %v1565_v52, %s3142_s13  ;;  %3063 = vrcp.f32 %v156_v50  ;;  %v155_v52 = vadd.f32 1.0, %v3060_v51  ;;  %v3152_v51 = vmov 98  }
 0x569   :  { %v2920_v54 = vpop.f32.mrf.mxu0 }
 0x56a   :  { %1678 = vrot.lane.b32.xlu1 %v2920_v54, %s3149_s30  ;;  %3065 = vrcp.f32 %v155_v52 }
 0x56b   :  { %v1665_v55 = vpop.f32.mrf.mxu0 }
 0x56c   :  { %1676 = vrot.lane.b32.xlu0 %v1665_v55, %s3149_s30  ;;  %v2581_v55 = vmul.f32 -5.0, %v3280_v16 }
 0x56d   :  { %v2927_v56 = vpop.f32.mrf.mxu0 }
 0x56e   :  { %1775 = vst.msk [vmem:[#allocation4 + $0x18] sm:$0xff] %vm222_vm1, %v2927_v56  ;;  %v151_v56 = vmul.f32 1.442695, %v2581_v55  ;;  %v2380_v55 = vld [vmem:[%s3858_s5 + $0x78] sm:$0xff] }
 0x56f   :  { %v1765_v57 = vpop.f32.mrf.mxu0  ;;  %2977 = vmatprep.subr.mxu0 %v2380_v55 }
 0x570   :  { %1774 = vst.msk [vmem:[#allocation4 + $0x10] sm:$0xff] %vm222_vm1, %v1765_v57  ;;  %vm1582_vm1 = vcmask 195712  }
 0x571   :  { %v2934_v58 = vpop.f32.mrf.mxu0 }
 0x572   :  { %1869 = vrot.lane.b32.xlu1 %v2934_v58, %s3148_s26 }
 0x573   :  { %v1856_v59 = vpop.f32.mrf.mxu0  ;;  %v3062_v54 = vpop.eup %3061 }
 0x574   :  { %1867 = vrot.lane.b32.xlu0 %v1856_v59, %s3148_s26  ;;  %v158_v10 = vadd.f32 1.0, %v3062_v54 }
 0x576   :  { %3067 = vrcp.f32 %v158_v10  ;;  %v2379_v10 = vld [vmem:[%s3858_s5 + $0x70] sm:$0xff] }
 0x577   :  { %v2941_v60 = vpop.f32.mrf.mxu0  ;;  %3069 = vpow2.f32 %v151_v56  ;;  %v2378_v56 = vld [vmem:[%s3858_s5 + $0x68] sm:$0xff] }
 0x578   :  { %1968 = vrot.lane.b32.xlu1 %v2941_v60, %s3142_s13  ;;  %v3064_v60 = vpop.eup %3063 }
 0x579   :  { %v1955_v61 = vpop.f32.mrf.mxu0 }
 0x57a   :  { %1966 = vrot.lane.b32.xlu0 %v1955_v61, %s3142_s13  ;;  %v2948_v0 = vpop.f32.mrf.mxu1 }
 0x57c   :  { %2067 = vrot.lane.b32.xlu1 %v2948_v0, %s3149_s30  ;;  %v2054_v1 = vpop.f32.mrf.mxu1 }
 0x57e   :  { %2065 = vrot.lane.b32.xlu0 %v2054_v1, %s3149_s30 }
 0x5d4   :  { %v1479_v2 = vpop.permute.xlu1 %1478 }
 0x5d5   :  { %1484 = vst.msk [vmem:[#allocation4 + $0x8] sm:$0xff] %vm1482_vm7, %v1479_v2  ;;  %v168_v2 = vadd.f32 1e-05, %v3064_v60  ;;  %v2372_v60 = vld [vmem:[%s3858_s5 + $0x38] sm:$0xff] }
 0x5d6   :  { %v1477_v3 = vpop.permute.xlu0 %1476 }
 0x5d7   :  { %1483 = vst.msk [vmem:[#allocation4] sm:$0xff] %vm1482_vm7, %v1477_v3  ;;  %v3066_v3 = vpop.eup %3065 }
 0x5d8   :  { %v1579_v4 = vpop.permute.xlu1 %1578 }
 0x5d9   :  { %1584 = vst.msk [vmem:[#allocation4 + $0x8] sm:$0xff] %vm1582_vm1, %v1579_v4 }
 0x5da   :  { %v1577_v6 = vpop.permute.xlu0 %1576 }
 0x5db   :  { %1583 = vst.msk [vmem:[#allocation4] sm:$0xff] %vm1582_vm1, %v1577_v6  ;;  %v172_v6 = vmul.f32 1.0986123, %v168_v2 }
 0x5dc   :  { %v1679_v7 = vpop.permute.xlu1 %1678 }
 0x5dd   :  { %1684 = vst.msk [vmem:[#allocation4 + $0x8] sm:$0xff] %vm1682_vm8, %v1679_v7  ;;  %v167_v7 = vadd.f32 1e-05, %v3066_v3 }
 0x5de   :  { %v1677_v8 = vpop.permute.xlu0 %1676 }
 0x5df   :  { %1683 = vst.msk [vmem:[#allocation4] sm:$0xff] %vm1682_vm8, %v1677_v8  ;;  %v3068_v8 = vpop.eup %3067 }
 0x5e4   :  { %v1870_v9 = vpop.permute.xlu1 %1869  ;;  %v2074_v15 = vld [vmem:[#allocation4 + $0x8] sm:$0xff] }
 0x5e5   :  { %1874 = vst.msk [vmem:[#allocation4 + $0x18] sm:$0xff] %vm1482_vm7, %v1870_v9  ;;  %v177_v9 = vmul.f32 1.442695, %v172_v6 }
 0x5e6   :  { %v1868_v11 = vpop.permute.xlu0 %1867  ;;  %v2073_v13 = vld [vmem:[#allocation4] sm:$0xff] }
 0x5e7   :  { %1873 = vst.msk [vmem:[#allocation4 + $0x10] sm:$0xff] %vm1482_vm7, %v1868_v11  ;;  %2957 = vmatprep.mubr.msk.f32.mxu0 %vm41_vm0, %v2073_v13  ;;  %v3070_v11 = vpop.eup %3069  ;;  %v171_v13 = vmul.f32 1.0986123, %v167_v7  ;;  %3071 = vpow2.f32 %v177_v9 }
 0x5e8   :  { %2958 = vmatmul.mubr.msk.f32.vlgmr.msra.gmra.mxu0 %vm41_vm0, %v2074_v15  ;;  %v170_v15 = vadd.f32 1e-05, %v3068_v8 }
 0x5e9   :  { %2978 = vmatpush3.msra.mxu0 %v2380_v55 }
 0x5ea   :  { %v1969_v17 = vpop.permute.xlu1 %1968  ;;  %2979 = vmatprep.subr.mxu0 %v2379_v10 }
 0x5eb   :  { %1973 = vst.msk [vmem:[#allocation4 + $0x18] sm:$0xff] %vm1582_vm1, %v1969_v17  ;;  %v157_v17 = vadd.f32 1.0, %v3070_v11  ;;  %2980 = vmatpush3.msra.mxu0 %v2379_v10  ;;  %v2368_v10 = vld [vmem:[%s3858_s5 + $0x18] sm:$0xff] }
 0x5ec   :  { %v1967_v18 = vpop.permute.xlu0 %1966  ;;  %2981 = vmatprep.subr.mxu0 %v2378_v56 }
 0x5ed   :  { %1972 = vst.msk [vmem:[#allocation4 + $0x10] sm:$0xff] %vm1582_vm1, %v1967_v18  ;;  %3073 = vrcp.f32 %v157_v17  ;;  %2982 = vmatpush3.msra.mxu0 %v2378_v56  ;;  %v2367_v56 = vld [vmem:[%s3858_s5 + $0x10] sm:$0xff] }
 0x5ee   :  { %v2068_v19 = vpop.permute.xlu1 %2067 }
 0x5ef   :  { %2072 = vst.msk [vmem:[#allocation4 + $0x18] sm:$0xff] %vm1682_vm8, %v2068_v19  ;;  %v175_v19 = vmul.f32 1.442695, %v171_v13 }
 0x5f0   :  { %v2066_v20 = vpop.permute.xlu0 %2065 }
 0x5f1   :  { %2071 = vst.msk [vmem:[#allocation4 + $0x10] sm:$0xff] %vm1682_vm8, %v2066_v20  ;;  %v174_v20 = vmul.f32 1.0986123, %v170_v15  ;;  %3075 = vpow2.f32 %v175_v19 }
 0x5f6   :  { %v2076_v22 = vld [vmem:[#allocation4 + $0x18] sm:$0xff] }
 0x5f8   :  { %v2075_v21 = vld [vmem:[#allocation4 + $0x10] sm:$0xff] }
 0x5f9   :  { %2960 = vmatprep.mubr.msk.f32.mxu0 %vm41_vm0, %v2075_v21 }
 0x5fa   :  { %2961 = vmatmul.mubr.msk.f32.gmra.mxu0 %vm41_vm0, %v2076_v22 }
 0x6a8   :  { %v2959_v24 = vpop.f32.mrf.mxu0 }
 0x6a9   :  { %v2170_v25 = vadd.f32 %v2959_v24, %v3575_v23 }
 0x6aa   :  { %v2164_v26 = vpop.f32.mrf.mxu0 }
 0x6ab   :  { %v2165_v27 = vadd.f32 %v3575_v23, %v2164_v26  ;;  %v2184_v28 = vadd.f32 %v2170_v25, %v3225_v5  ;;  %v3110_v5 = vld [vmem:[%s3853_s0 + $0x10] sm:$0xff]  ;;  %v181_v25 = vmul.f32 1.442695, %v174_v20 }
 0x6ad   :  { %v2190_v29 = vsel %vm41_vm0, %v2184_v28, 0.0  ;;  %v2183_v31 = vadd.f32 %v3109_v30, %v2165_v27  ;;  %3077 = vpow2.f32 %v181_v25 }
 0x6ae   :  { %2191 = vadd.xlane.f32.xlu1 %v2190_v29 }
 0x6af   :  { %v2187_v32 = vsel %vm41_vm0, %v2183_v31, 0.0 }
 0x6b0   :  { %2188 = vadd.xlane.f32.xlu0 %v2187_v32  ;;  %v3072_v32 = vpop.eup %3071 }
 0x6ba   :  { %v2962_v33 = vpop.f32.mrf.mxu0 }
 0x6bb   :  { %v2180_v35 = vadd.f32 %v2962_v33, %v3575_v23  ;;  %v3625_v33 = vadd.f32 -1.0, %v3072_v32 }
 0x6bc   :  { %v2174_v34 = vpop.f32.mrf.mxu0 }
 0x6bd   :  { %v2175_v36 = vadd.f32 %v3575_v23, %v2174_v34  ;;  %v3594_v40 = vadd.f32 %v3111_v39, %v2180_v35  ;;  %v3074_v34 = vpop.eup %3073  ;;  %3079 = vrcp.f32 %v3625_v33 }
 0x6be   :  { %v3076_v35 = vpop.eup %3075 }
 0x6bf   :  { %v2185_v37 = vadd.f32 %v3110_v5, %v2175_v36  ;;  %v2196_v41 = vsel %vm41_vm0, %v3594_v40, 0.0  ;;  %v169_v36 = vadd.f32 1e-05, %v3074_v34  ;;  %v3628_v5 = vadd.f32 -1.0, %v3076_v35 }
 0x6c1   :  { %v2193_v38 = vsel %vm41_vm0, %v2185_v37, 0.0  ;;  %v173_v39 = vmul.f32 1.0986123, %v169_v36  ;;  %3081 = vrcp.f32 %v3628_v5 }
 0x6c2   :  { %2194 = vadd.xlane.f32.xlu0 %v2193_v38  ;;  %v2258_v38 = vld [vmem:[%s3857_s4 + $0x18] sm:$0xff] }
 0x6c3   :  { %2963 = vmatprep.subr.mxu1 %v2258_v38  ;;  %v179_v44 = vmul.f32 1.442695, %v173_v39 }
 0x6c4   :  { %2964 = vmatpush3.msra.mxu1 %v2258_v38 }
 0x6c6   :  { %2197 = vadd.xlane.f32.xlu0 %v2196_v41 }
 0x737   :  { %v2192_v57 = vpop.xlane.xlu1 %2191 }
 0x738   :  { %v2201_v12 = vmul.f32 0.03125, %v2192_v57  ;;  %v2376_v57 = vld [vmem:[%s3858_s5 + $0x58] sm:$0xff] }
 0x739   :  { %v2189_v58 = vpop.xlane.xlu0 %2188 }
 0x73a   :  { %v3604_v59 = vsub.f32 %v2184_v28, %v2201_v12  ;;  %v2200_v14 = vmul.f32 0.03125, %v2189_v58  ;;  %v2375_v12 = vld [vmem:[%s3858_s5 + $0x50] sm:$0xff]  ;;  %v2374_v58 = vld [vmem:[%s3858_s5 + $0x48] sm:$0xff] }
 0x73c   :  { %v3606_v61 = vsub.f32 %v2183_v31, %v2200_v14  ;;  %v2209_v0 = vmul.f32 %v3604_v59, %v3604_v59  ;;  %v2373_v14 = vld [vmem:[%s3858_s5 + $0x40] sm:$0xff] }
 0x73e   :  { %v2215_v1 = vsel %vm41_vm0, %v2209_v0, 0.0  ;;  %v2208_v16 = vmul.f32 %v3606_v61, %v3606_v61  ;;  %v2371_v0 = vld [vmem:[%s3858_s5 + $0x30] sm:$0xff] }
 0x73f   :  { %2216 = vadd.xlane.f32.xlu0 %v2215_v1  ;;  %v2370_v1 = vld [vmem:[%s3858_s5 + $0x28] sm:$0xff] }
 0x740   :  { %v2212_v4 = vsel %vm41_vm0, %v2208_v16, 0.0  ;;  %v2369_v16 = vld [vmem:[%s3858_s5 + $0x20] sm:$0xff] }
 0x741   :  { %2213 = vadd.xlane.f32.xlu1 %v2212_v4 }
 0x74b   :  { %v2195_v18 = vpop.xlane.xlu0 %2194 }
 0x74c   :  { %v2202_v21 = vmul.f32 0.03125, %v2195_v18 }
 0x74e   :  { %v3614_v22 = vsub.f32 %v2185_v37, %v2202_v21  ;;  %v3078_v37 = vpop.eup %3077 }
 0x74f   :  { %v2198_v24 = vpop.xlane.xlu0 %2197  ;;  %v3637_v41 = vadd.f32 -1.0, %v3078_v37  ;;  %v3080_v46 = vpop.eup %3079 }
 0x750   :  { %v2203_v26 = vmul.f32 0.03125, %v2198_v24  ;;  %v2210_v27 = vmul.f32 %v3614_v22, %v3614_v22  ;;  %v3082_v47 = vpop.eup %3081 }
 0x751   :  { %3083 = vrcp.f32 %v3637_v41 }
 0x752   :  { %v3619_v28 = vsub.f32 %v3594_v40, %v2203_v26  ;;  %v2218_v29 = vsel %vm41_vm0, %v2210_v27, 0.0  ;;  %v2257_v40 = vld [vmem:[%s3857_s4 + $0x10] sm:$0xff]  ;;  %3085 = vpow2.f32 %v179_v44 }
 0x753   :  { %2219 = vadd.xlane.f32.xlu1 %v2218_v29  ;;  %2965 = vmatprep.subr.mxu1 %v2257_v40 }
 0x754   :  { %v2211_v30 = vmul.f32 %v3619_v28, %v3619_v28  ;;  %2966 = vmatpush3.msra.mxu1 %v2257_v40 }
 0x755   :  { %2967 = vmatprep.subr.mxu1 %v2256_v43 }
 0x756   :  { %v2221_v31 = vsel %vm41_vm0, %v2211_v30, 0.0  ;;  %2968 = vmatpush3.msra.mxu1 %v2256_v43 }
 0x757   :  { %2222 = vadd.xlane.f32.xlu0 %v2221_v31  ;;  %2969 = vmatprep.subr.mxu1 %v2255_v45 }
 0x758   :  { %2970 = vmatpush3.msra.mxu1 %v2255_v45 }
 0x75e   :  { %v3652_v49 = vpop.eup %3083 }
 0x75f   :  { %v3086_v50 = vpop.eup %3085 }
 0x760   :  { %v3656_v52 = vadd.f32 -1.0, %v3086_v50 }
 0x762   :  { %3087 = vrcp.f32 %v3656_v52 }
 0x764   :  { %2241 = vrot.lane.b32.xlu1 %v3575_v23, %s3135_s27 }
 0x768   :  { %2381 = vrot.lane.b32.xlu1 %v3575_v23, %s3143_s14 }
 0x76c   :  { %316 = vperm.xlu1 %3038, %v3080_v46  }
 0x76d   :  { %2248 = vrot.lane.b32.xlu0 %v3575_v23, %s3144_s15  ;;  %v3153_v23 = vmov 99  }
 0x76f   :  { %v3660_v54 = vpop.eup %3087 }
 0x770   :  { %3039 = vset.pattern.permute.xlu1 %v3151_v48 }
 0x771   :  { %424 = vperm.xlu1 %3039, %v3082_v47   ;;  %311 = vperm.xlu0 %3037, %v3082_v47  }
 0x775   :  { %428 = vperm.xlu1 %3039, %v3080_v46   ;;  %764 = vperm.xlu0 %3037, %v3652_v49  }
 0x779   :  { %3040 = vset.pattern.permute.xlu1 %v3152_v51  ;;  %3044 = vset.pattern.permute.xlu0 %v3151_v48 }
 0x77a   :  { %536 = vperm.xlu1 %3040, %v3082_v47  }
 0x77e   :  { %540 = vperm.xlu1 %3040, %v3080_v46  }
 0x782   :  { %3041 = vset.pattern.permute.xlu1 %v3153_v23 }
 0x783   :  { %648 = vperm.xlu1 %3041, %v3082_v47  }
 0x787   :  { %652 = vperm.xlu1 %3041, %v3080_v46  }
 0x78b   :  { %3042 = vset.pattern.permute.xlu1 %v3150_v42  ;;  %v2377_v42 = vld [vmem:[%s3858_s5 + $0x60] sm:$0xff] }
 0x78c   :  { %759 = vperm.xlu1 %3042, %v3660_v54   ;;  %2983 = vmatprep.subr.mxu0 %v2377_v42 }
 0x78d   :  { %2984 = vmatpush3.msra.mxu0 %v2377_v42  ;;  %v2366_v42 = vld [vmem:[%s3858_s5 + $0x8] sm:$0xff] }
 0x78e   :  { %2985 = vmatprep.subr.mxu0 %v2376_v57 }
 0x78f   :  { %2986 = vmatpush3.msra.mxu0 %v2376_v57  ;;  %v2365_v57 = vld [vmem:[%s3858_s5] sm:$0xff] }
 0x790   :  { %3043 = vset.pattern.permute.xlu1 %v3151_v48  ;;  %2987 = vmatprep.subr.mxu0 %v2375_v12 }
 0x791   :  { %872 = vperm.xlu1 %3043, %v3660_v54   ;;  %2988 = vmatpush3.msra.mxu0 %v2375_v12  ;;  %v2656_v12 = vld [vmem:[%s3855_s2 + $0x2] ss:$0 sm:$0xff] }
 0x792   :  { %2989 = vmatprep.subr.mxu0 %v2374_v58 }
 0x793   :  { %2990 = vmatpush3.msra.mxu0 %v2374_v58 }
 0x794   :  { %2991 = vmatprep.subr.mxu0 %v2373_v14 }
 0x795   :  { %3045 = vset.pattern.permute.xlu1 %v3152_v51  ;;  %2992 = vmatpush3.msra.mxu0 %v2373_v14 }
 0x796   :  { %2993 = vmatprep.subr.mxu0 %v2372_v60 }
 0x797   :  { %2994 = vmatpush3.msra.mxu0 %v2372_v60 }
 0x798   :  { %2995 = vmatprep.subr.mxu0 %v2371_v0 }
 0x799   :  { %2996 = vmatpush3.msra.mxu0 %v2371_v0 }
 0x79a   :  { %2997 = vmatprep.subr.mxu0 %v2370_v1 }
 0x79b   :  { %2998 = vmatpush3.msra.mxu0 %v2370_v1 }
 0x79c   :  { %2999 = vmatprep.subr.mxu0 %v2369_v16 }
 0x79d   :  { %3000 = vmatpush3.msra.mxu0 %v2369_v16 }
 0x79e   :  { %3001 = vmatprep.subr.mxu0 %v2368_v10 }
 0x79f   :  { %3002 = vmatpush3.msra.mxu0 %v2368_v10 }
 0x7a0   :  { %3003 = vmatprep.subr.mxu0 %v2367_v56 }
 0x7a1   :  { %3004 = vmatpush3.msra.mxu0 %v2367_v56 }
 0x7a2   :  { %3005 = vmatprep.subr.mxu0 %v2366_v42 }
 0x7a3   :  { %3006 = vmatpush3.msra.mxu0 %v2366_v42 }
 0x7a4   :  { %3007 = vmatprep.subr.mxu0 %v2365_v57 }
 0x7a5   :  { %3008 = vmatpush3.msra.mxu0 %v2365_v57 }
 0x7c8   :  { %v2217_v2 = vpop.xlane.xlu0 %2216 }
 0x7c9   :  { %v2225_v3 = vmul.f32 0.03125, %v2217_v2 }
 0x7ca   :  { %v2214_v4 = vpop.xlane.xlu1 %2213 }
 0x7cb   :  { %v2224_v6 = vmul.f32 0.03125, %v2214_v4  ;;  %v2229_v7 = vadd.f32 1e-05, %v2225_v3 }
 0x7cd   :  { %v2228_v8 = vadd.f32 1e-05, %v2224_v6  ;;  %3089 = vrsqrt.f32 %v2229_v7 }
 0x7cf   :  { %3091 = vrsqrt.f32 %v2228_v8 }
 0x7da   :  { %v3090_v11 = vpop.eup %3089 }
 0x7db   :  { %v2237_v21 = vmul.f32 %v3090_v11, %v3604_v59 }
 0x7dc   :  { %v2220_v9 = vpop.xlane.xlu1 %2219  ;;  %v3092_v15 = vpop.eup %3091 }
 0x7dd   :  { %v2226_v13 = vmul.f32 0.03125, %v2220_v9  ;;  %v2236_v20 = vmul.f32 %v3092_v15, %v3606_v61 }
 0x7df   :  { %v2230_v17 = vadd.f32 1e-05, %v2226_v13 }
 0x7e0   :  { %v2242_v18 = vpop.permute.xlu1 %2241  ;;  %v2223_v19 = vpop.xlane.xlu0 %2222 }
 0x7e1   :  { %3093 = vrsqrt.f32 %v2230_v17  ;;  %v2227_v24 = vmul.f32 0.03125, %v2223_v19  ;;  %v2244_v25 = vmul.f32 %v2242_v18, %v2236_v20  ;;  %v2245_v26 = vmul.f32 %v2242_v18, %v2237_v21 }
 0x7e3   :  { %v2231_v27 = vadd.f32 1e-05, %v2227_v24 }
 0x7e4   :  { %v3704_v29 = vpop.permute.xlu1 %2381  ;;  %v2249_v30 = vpop.permute.xlu0 %2248 }
 0x7e5   :  { %3095 = vrsqrt.f32 %v2231_v27  ;;  %v3706_v31 = vadd.f32 %v2249_v30, %v2244_v25  ;;  %v3708_v32 = vadd.f32 %v2249_v30, %v2245_v26 }
 0x7e7   :  { %2971 = vmatprep.mubr.msk.f32.mxu1 %vm41_vm0, %v3706_v31 }
 0x7e8   :  { %v317_v34 = vpop.permute.xlu1 %316  ;;  %2972 = vmatmul.mubr.msk.f32.vlgmr.msra.gmra.mxu1 %vm41_vm0, %v3708_v32 }
 0x7e9   :  { %320 = vst.msk [vmem:[#allocation3 + $0x8] sm:$0xff] %vm306_vm2, %v317_v34 }
 0x7ec   :  { %v425_v59 = vpop.permute.xlu1 %424  ;;  %v312_v61 = vpop.permute.xlu0 %311 }
 0x7ed   :  { %319 = vst.msk [vmem:[#allocation3] sm:$0xff] %vm306_vm2, %v312_v61  ;;  %vm211_vm2 = vcmask 31744  }
 0x7ee   :  { %v3094_v35 = vpop.eup %3093  ;;  %431 = vst.msk [vmem:[#allocation3] sm:$0xff] %vm420_vm9, %v425_v59 }
 0x7ef   :  { %v2238_v36 = vmul.f32 %v3094_v35, %v3614_v22 }
 0x7f0   :  { %v429_v37 = vpop.permute.xlu1 %428 }
 0x7f1   :  { %v2246_v38 = vmul.f32 %v2242_v18, %v2238_v36  ;;  %432 = vst.msk [vmem:[#allocation3 + $0x8] sm:$0xff] %vm420_vm9, %v429_v37 }
 0x7f2   :  { %v3096_v39 = vpop.eup %3095 }
 0x7f3   :  { %v2239_v40 = vmul.f32 %v3096_v39, %v3619_v28  ;;  %v3720_v43 = vadd.f32 %v2249_v30, %v2246_v38  ;;  %v765_v28 = vpop.permute.xlu0 %764 }
 0x7f5   :  { %v2247_v44 = vmul.f32 %v2242_v18, %v2239_v40  ;;  %2974 = vmatprep.mubr.msk.f32.mxu1 %vm41_vm0, %v3720_v43  ;;  %v537_v45 = vpop.permute.xlu1 %536 }
 0x7f6   :  { %543 = vst.msk [vmem:[#allocation3] sm:$0xff] %vm532_vm10, %v537_v45 }
 0x7f7   :  { %v2254_v46 = vadd.f32 %v2249_v30, %v2247_v44 }
 0x7f9   :  { %2975 = vmatmul.mubr.msk.f32.gmra.mxu1 %vm41_vm0, %v2254_v46  ;;  %v541_v22 = vpop.permute.xlu1 %540 }
 0x7fa   :  { %544 = vst.msk [vmem:[#allocation3 + $0x8] sm:$0xff] %vm532_vm10, %v541_v22 }
 0x7fe   :  { %v649_v47 = vpop.permute.xlu1 %648 }
 0x7ff   :  { %655 = vst.msk [vmem:[#allocation3] sm:$0xff] %vm644_vm11, %v649_v47 }
 0x802   :  { %v653_v48 = vpop.permute.xlu1 %652 }
 0x803   :  { %656 = vst.msk [vmem:[#allocation3 + $0x8] sm:$0xff] %vm644_vm11, %v653_v48 }
 0x804   :  { %768 = vst.msk [vmem:[#allocation3 + $0x8] sm:$0xff] %vm754_vm12, %v765_v28  ;;  %v3784_v28 = vld [vmem:[%s3855_s2 + $0x3] ss:$0 sm:$0xff] }
 0x807   :  { %v760_v50 = vpop.permute.xlu1 %759 }
 0x808   :  { %767 = vst.msk [vmem:[#allocation3] sm:$0xff] %vm754_vm12, %v760_v50 }
 0x80c   :  { %v873_v55 = vpop.permute.xlu1 %872 }
 0x80d   :  { %879 = vst.msk [vmem:[#allocation3] sm:$0xff] %vm868_vm13, %v873_v55 }
 0x8a8   :  { %v2973_v58 = vpop.f32.mrf.mxu1 }
 0x8a9   :  { %v2348_v14 = vadd.f32 %v2973_v58, %v2656_v12 }
 0x8aa   :  { %v2342_v60 = vpop.f32.mrf.mxu1 }
 0x8ab   :  { %v2343_v0 = vadd.f32 %v2656_v12, %v2342_v60  ;;  %v2362_v16 = vmax.f32 %v2348_v14, 0.0 }
 0x8ad   :  { %v2361_v1 = vmax.f32 %v2343_v0, 0.0 }
 0x8af   :  { %3009 = vmatprep.mubr.f32.mxu0 %v2361_v1 }
 0x8b0   :  { %3010 = vmatmul.mubr.f32.vlgmr.msra.gmra.mxu0 %v2362_v16 }
 0x8b9   :  { %v2976_v2 = vpop.f32.mrf.mxu1 }
 0x8ba   :  { %v2358_v3 = vadd.f32 %v2976_v2, %v2656_v12 }
 0x8bb   :  { %v2352_v4 = vpop.f32.mrf.mxu1 }
 0x8bc   :  { %v2353_v6 = vadd.f32 %v2656_v12, %v2352_v4  ;;  %v2364_v8 = vmax.f32 %v2358_v3, 0.0 }
 0x8be   :  { %v2363_v7 = vmax.f32 %v2353_v6, 0.0 }
 0x8c0   :  { %3012 = vmatprep.mubr.f32.mxu0 %v2363_v7 }
 0x8c1   :  { %3013 = vmatmul.mubr.f32.gmra.mxu0 %v2364_v8 }
 0x970   :  { %v3011_v9 = vpop.f32.mrf.mxu0 }
 0x971   :  { %v2456_v11 = vadd.f32 %v3011_v9, %v3704_v29 }
 0x972   :  { %v2450_v13 = vpop.f32.mrf.mxu0 }
 0x973   :  { %v2470_v15 = vadd.f32 %v2456_v11, %v3708_v32  ;;  %v2451_v17 = vadd.f32 %v2450_v13, %v3704_v29 }
 0x975   :  { %v2469_v18 = vadd.f32 %v2451_v17, %v3706_v31  ;;  %v2477_v19 = vsel %vm41_vm0, %v2470_v15, 0.0 }
 0x976   :  { %2478 = vadd.xlane.f32.xlu0 %v2477_v19 }
 0x977   :  { %v2474_v20 = vsel %vm41_vm0, %v2469_v18, 0.0 }
 0x978   :  { %2475 = vadd.xlane.f32.xlu1 %v2474_v20 }
 0x981   :  { %v3014_v21 = vpop.f32.mrf.mxu0 }
 0x982   :  { %v2466_v24 = vadd.f32 %v3014_v21, %v3704_v29 }
 0x983   :  { %v2460_v25 = vpop.f32.mrf.mxu0 }
 0x984   :  { %v2472_v26 = vadd.f32 %v2466_v24, %v2254_v46  ;;  %v2461_v27 = vadd.f32 %v2460_v25, %v3704_v29 }
 0x986   :  { %v2471_v30 = vadd.f32 %v2461_v27, %v3720_v43  ;;  %v2483_v32 = vsel %vm41_vm0, %v2472_v26, 0.0 }
 0x987   :  { %2484 = vadd.xlane.f32.xlu1 %v2483_v32 }
 0x988   :  { %v2480_v31 = vsel %vm41_vm0, %v2471_v30, 0.0 }
 0x989   :  { %2481 = vadd.xlane.f32.xlu0 %v2480_v31 }
 0x998   :  { %984 = vperm.xlu1 %3045, %v3660_v54  }
 0x99c   :  { %3047 = vset.pattern.permute.xlu1 %v3153_v23 }
 0x99f   :  { %876 = vperm.xlu0 %3044, %v3652_v49  }
 0x9a3   :  { %3046 = vset.pattern.permute.xlu0 %v3152_v51 }
 0x9ff   :  { %v2479_v34 = vpop.xlane.xlu0 %2478 }
 0xa00   :  { %v2487_v59 = vmul.f32 0.03125, %v2479_v34 }
 0xa01   :  { %v2476_v61 = vpop.xlane.xlu1 %2475 }
 0xa02   :  { %v3762_v29 = vsub.f32 %v2470_v15, %v2487_v59  ;;  %v2486_v35 = vmul.f32 0.03125, %v2476_v61 }
 0xa04   :  { %v3764_v36 = vsub.f32 %v2469_v18, %v2486_v35  ;;  %v2495_v37 = vmul.f32 %v3762_v29, %v3762_v29 }
 0xa06   :  { %v2501_v38 = vsel %vm41_vm0, %v2495_v37, 0.0  ;;  %v2494_v39 = vmul.f32 %v3764_v36, %v3764_v36 }
 0xa07   :  { %2502 = vadd.xlane.f32.xlu0 %v2501_v38 }
 0xa08   :  { %v2498_v40 = vsel %vm41_vm0, %v2494_v39, 0.0 }
 0xa09   :  { %2499 = vadd.xlane.f32.xlu1 %v2498_v40 }
 0xa10   :  { %v2485_v51 = vpop.xlane.xlu1 %2484 }
 0xa11   :  { %v2489_v43 = vmul.f32 0.03125, %v2485_v51 }
 0xa12   :  { %v2482_v22 = vpop.xlane.xlu0 %2481 }
 0xa13   :  { %v3772_v44 = vsub.f32 %v2472_v26, %v2489_v43 }
 0xa14   :  { %v985_v45 = vpop.permute.xlu1 %984 }
 0xa15   :  { %991 = vst.msk [vmem:[#allocation3] sm:$0xff] %vm980_vm14, %v985_v45  ;;  %v2497_v46 = vmul.f32 %v3772_v44, %v3772_v44 }
 0xa17   :  { %v2507_v47 = vsel %vm41_vm0, %v2497_v46, 0.0 }
 0xa18   :  { %2508 = vadd.xlane.f32.xlu0 %v2507_v47 }
 0xa1a   :  { %1096 = vperm.xlu1 %3047, %v3660_v54   ;;  %v877_v48 = vpop.permute.xlu0 %876  ;;  %v2488_v54 = vmul.f32 0.03125, %v2482_v22 }
 0xa1b   :  { %880 = vst.msk [vmem:[#allocation3 + $0x8] sm:$0xff] %vm868_vm13, %v877_v48 }
 0xa1c   :  { %v3794_v50 = vsub.f32 %v2471_v30, %v2488_v54 }
 0xa1e   :  { %1100 = vperm.xlu1 %3047, %v3652_v49   ;;  %v2496_v55 = vmul.f32 %v3794_v50, %v3794_v50 }
 0xa20   :  { %v2504_v10 = vsel %vm41_vm0, %v2496_v55, 0.0 }
 0xa22   :  { %2535 = vrot.lane.b32.xlu1 %v3784_v28, %s3135_s27 }
 0xa26   :  { %199 = vrot.lane.b32.xlu1 %v3628_v5, %s3143_s14  ;;  %v1268_v5 = vcvt.s32.f32 %v3360_v62  ;;  %v1269_v62 = vcvt.s32.f32 %v3443_v53 }
 0xa2a   :  { %201 = vrot.lane.b32.xlu1 %v3625_v33, %s3143_s14  ;;  %v1270_v33 = vand.u32 15, %v3362_v63 }
 0xa2e   :  { %988 = vperm.xlu0 %3046, %v3652_v49   ;;  %v1271_v49 = vcvt.s32.f32 %v1270_v33 }
 0xa30   :  { %v1273_v9 = vsub.f32 %v1269_v62, %v1271_v49 }
 0xa32   :  { %3048 = vset.pattern.permute.xlu0 %v3153_v23  ;;  %v1272_v23 = vsub.f32 %v1268_v5, %v1271_v49  ;;  %v1275_v20 = vand.u32 2147483647, %v1273_v9 }
 0xa34   :  { %v1274_v12 = vand.u32 2147483647, %v1272_v23  ;;  %v1281_v27 = vmul.f32 -0.5, %v1275_v20 }
 0xa36   :  { %v1280_v1 = vmul.f32 -0.5, %v1274_v12  ;;  %v1283_v30 = vmul.f32 %v1281_v27, %v1275_v20 }
 0xa4e   :  { %2505 = vadd.xlane.f32.xlu1 %v2504_v10 }
 0xa5f   :  { %203 = vrot.lane.b32.xlu1 %v3656_v52, %s3143_s14  ;;  %v1282_v52 = vmul.f32 %v1280_v1, %v1274_v12 }
 0xa63   :  { %205 = vrot.lane.b32.xlu1 %v3637_v41, %s3143_s14 }
 0xa90   :  { %v2503_v56 = vpop.xlane.xlu0 %2502 }
 0xa91   :  { %v2511_v42 = vmul.f32 0.03125, %v2503_v56 }
 0xa92   :  { %v2500_v57 = vpop.xlane.xlu1 %2499 }
 0xa93   :  { %v2515_v58 = vadd.f32 1e-05, %v2511_v42  ;;  %v2510_v14 = vmul.f32 0.03125, %v2500_v57 }
 0xa95   :  { %3097 = vrsqrt.f32 %v2515_v58  ;;  %v2514_v60 = vadd.f32 1e-05, %v2510_v14 }
 0xa96   :  { %v1097_v0 = vpop.permute.xlu1 %1096 }
 0xa97   :  { %3099 = vrsqrt.f32 %v2514_v60  ;;  %1103 = vst.msk [vmem:[#allocation3] sm:$0xff] %vm1092_vm15, %v1097_v0 }
 0xa9a   :  { %v1101_v41 = vpop.permute.xlu1 %1100 }
 0xa9e   :  { %v1276_v63 = vld [vmem:[#allocation3] sm:$0xff]  ;;  %v3806_v16 = vpop.permute.xlu1 %2535 }
 0xa9f   :  { %v1284_v2 = vmul.f32 %v1282_v52, %v1276_v63  ;;  %v1278_v32 = vmul.f32 0.3989423, %v1276_v63 }
 0xaa1   :  { %v1286_v3 = vmul.f32 %v1284_v2, %v1276_v63  ;;  %v2509_v4 = vpop.xlane.xlu0 %2508 }
 0xaa2   :  { %v3098_v6 = vpop.eup %3097  ;;  %v2513_v7 = vmul.f32 0.03125, %v2509_v4  ;;  %v200_v8 = vpop.permute.xlu1 %199 }
 0xaa3   :  { %v1288_v11 = vmul.f32 1.442695, %v1286_v3  ;;  %v2523_v13 = vmul.f32 %v3098_v6, %v3762_v29  ;;  %212 = vst.msk [vmem:[%s3862_s9] sm:$0xff] %vm211_vm2, %v200_v8 }
 0xaa4   :  { %v3100_v15 = vpop.eup %3099  ;;  %v2517_v17 = vadd.f32 1e-05, %v2513_v7 }
 0xaa5   :  { %3101 = vpow2.f32 %v1288_v11  ;;  %v2522_v53 = vmul.f32 %v3100_v15, %v3764_v36  ;;  %v2531_v18 = vmul.f32 %v3784_v28, %v2523_v13 }
 0xaa6   :  { %3103 = vrsqrt.f32 %v2517_v17  ;;  %v202_v19 = vpop.permute.xlu1 %201 }
 0xaa7   :  { %v2530_v21 = vmul.f32 %v3784_v28, %v2522_v53  ;;  %v2539_v24 = vadd.f32 %v3806_v16, %v2531_v18  ;;  %213 = vst.msk [vmem:[%s3862_s9 + $0x8] sm:$0xff] %vm211_vm2, %v202_v19 }
 0xaa9   :  { %v2538_v25 = vadd.f32 %v3806_v16, %v2530_v21  ;;  %2543 = vst.msk [vmem:[#allocation5 + $0x8] sm:$0xff] %vm41_vm0, %v2539_v24  ;;  %v989_v26 = vpop.permute.xlu0 %988 }
 0xaaa   :  { %992 = vst.msk [vmem:[#allocation3 + $0x8] sm:$0xff] %vm980_vm14, %v989_v26 }
 0xaab   :  { %2542 = vst.msk [vmem:[#allocation5] sm:$0xff] %vm41_vm0, %v2538_v25 }
 0xaac   :  { %1104 = vst.msk [vmem:[#allocation3 + $0x8] sm:$0xff] %vm1092_vm15, %v1101_v41 }
 0xab2   :  { %v3102_v31 = vpop.eup %3101 }
 0xab3   :  { %v1277_v34 = vld [vmem:[#allocation3 + $0x8] sm:$0xff]  ;;  %v3104_v59 = vpop.eup %3103  ;;  %v1292_v61 = vmul.f32 %v3102_v31, %v1278_v32 }
 0xab4   :  { %v1285_v29 = vmul.f32 %v1283_v30, %v1277_v34  ;;  %v2525_v35 = vmul.f32 %v3104_v59, %v3772_v44  ;;  %v1279_v40 = vmul.f32 0.3989423, %v1277_v34 }
 0xab5   :  { %1294 = vst [vmem:[%s3861_s8] sm:$0xff] %v1292_v61 }
 0xab6   :  { %v1287_v36 = vmul.f32 %v1285_v29, %v1277_v34  ;;  %v2533_v37 = vmul.f32 %v3784_v28, %v2525_v35 }
 0xab8   :  { %v1290_v38 = vmul.f32 1.442695, %v1287_v36  ;;  %v2541_v39 = vadd.f32 %v3806_v16, %v2533_v37 }
 0xaba   :  { %3105 = vpow2.f32 %v1290_v38  ;;  %2545 = vst.msk [vmem:[#allocation5 + $0x18] sm:$0xff] %vm41_vm0, %v2541_v39 }
 0xac7   :  { %v3106_v51 = vpop.eup %3105 }
 0xac8   :  { %v1293_v43 = vmul.f32 %v3106_v51, %v1279_v40 }
 0xaca   :  { %1295 = vst [vmem:[%s3861_s8 + $0x8] sm:$0xff] %v1293_v43  ;;  %s3154_s8 = smov [#allocation5]  }
 0xacb   :  { %s2551_s23 = sshll.u32 %s3154_s8, 4  ;;  %s2552_s23 = int_to_ptr.vmem [resolvable:$true] %s2551_s23 }
 0xacc   :  { %s3112_s1 = scalar_lea.vmem %s2552_s23, 512  ;;  %p3117_p1 = scmp.lt.s32.totalorder %s2552_s23, %s2552_s23 }
 0xacd   :  { %p3113_p0 = scmp.ne.s32.totalorder %s2552_s23, %s3112_s1  ;;  %p3118_p2 = scmp.lt.s32.totalorder %s3112_s1, %s3112_s1 }
 0xacf   :  { %p3119_p3 = por %p3118_p2, %p3117_p1 }
 0xad1   :  { %p3120_p4 = pnand %p3119_p3, %p3113_p0 }
 0xad7   :  { %v2506_v44 = vpop.xlane.xlu1 %2505 }
 0xad8   :  { %v2512_v45 = vmul.f32 0.03125, %v2506_v44 }
 0xada   :  { %v2516_v46 = vadd.f32 1e-05, %v2512_v45 }
 0xadb   :  { %v204_v22 = vpop.permute.xlu1 %203 }
 0xadc   :  { %3107 = vrsqrt.f32 %v2516_v46  ;;  %214 = vst.msk [vmem:[%s3862_s9 + $0x10] sm:$0xff] %vm211_vm2, %v204_v22 }
 0xadf   :  { %v206_v47 = vpop.permute.xlu1 %205 }
 0xae0   :  { %215 = vst.msk [vmem:[%s3862_s9 + $0x18] sm:$0xff] %vm211_vm2, %v206_v47 }
 0xae9   :  { %v3108_v48 = vpop.eup %3107 }
 0xaea   :  { %v2524_v54 = vmul.f32 %v3108_v48, %v3794_v50 }
 0xaec   :  { %v2532_v55 = vmul.f32 %v3784_v28, %v2524_v54 }
 0xaee   :  { %v2540_v10 = vadd.f32 %v3806_v16, %v2532_v55 }
 0xaf0   :  { %2544 = vst.msk [vmem:[#allocation5 + $0x10] sm:$0xff] %vm41_vm0, %v2540_v10 }
 0xaf1   :  { %3123 = shalt.err (!%p3120_p4)
}
 0xaf2   :  { %s3155_s9 = smov 128  }
 0xaf3   :  { %2557 = dma.vmem_to_hbm [thread:$0]  %s2552_s23, 512, %s3859_s6, [#allocation6], %s3155_s9, %s3155_s9, %s3148_s26  }
 0xaf4   :  { %3132 = dma.done.wait [#allocation6], 512  }
 0xaf5   :  { %3133 = vsyncadd [#allocation6], 4294966784 }
 0xaf6   :  { %2573 = vsyncpa [#allocation6], 1 }

</bundles_post_ra>
